<compile_context>
chip_gen: v5e
topology: v5e:2x2
jax: 0.10.0
libtpu: 0.0.40
codegen_flags: <defaults>
</compile_context>

<pallas_src>
import math

import jax
import jax.numpy as jnp
from jax import lax
from jax.experimental import pallas as pl
from jax.experimental.pallas import tpu as pltpu

_EPS = 1e-5                      # PyTorch nn.LayerNorm default
_INV_SQRT2 = 0.7071067811865476  # exact (erf) GELU == torch.nn.GELU default


def sinusoidal_position_embedding(t, dim, base=1000):
    """Pure-JAX port of the PyTorch helper. t: (B,) -> (B, dim)."""
    half_dim = dim // 2
    freq = math.log(base) / (half_dim - 1)
    freq = jnp.exp(jnp.arange(half_dim, dtype=jnp.float32) * -freq)
    ang = t.astype(jnp.float32)[:, None] * freq[None, :]
    return jnp.concatenate([jnp.sin(ang), jnp.cos(ang)], axis=1)


# ---------------------------------------------------------------------------
# Kernel
# ---------------------------------------------------------------------------
def _residual_block_kernel(x_ref, temb_ref,
                           wt_ref, bt_ref,
                           w1_ref, b1_ref, g1_ref, beta1_ref,
                           w2_ref, b2_ref, g2_ref, beta2_ref,
                           o_ref):
    """Fused: time scale/shift -> (Linear -> GELU -> LayerNorm) x2 -> + residual."""
    D = x_ref.shape[-1]

    # --- single fused time projection (tm, Td) @ (Td, 2D) on the MXU,
    #     bf16 operands, f32 accumulate; scale/shift via static lane slices
    #     (tile-aligned when D % 128 == 0).
    temb = temb_ref[...].astype(jnp.bfloat16)
    ts = jnp.dot(temb, wt_ref[...],
                 preferred_element_type=jnp.float32) + bt_ref[...]
    scale = ts[:, :D]
    shift = ts[:, D:]

    # --- FiLM-style modulation of the input: x * (scale + 1) + shift  (f32)
    h = x_ref[...].astype(jnp.float32) * (scale + 1.0) + shift

    def linear_block(h, w_ref, b_ref, g_ref, beta_ref):
        # Linear: (tm, D) @ (D, D) on the MXU, f32 accumulate
        y = jnp.dot(h.astype(jnp.bfloat16), w_ref[...],
                    preferred_element_type=jnp.float32) + b_ref[...]
        # GELU (exact / erf form, matching torch.nn.GELU default).
        # (tanh-approx GELU would move this to the EUP slot -- only worth it if
        #  bundle profiling shows the VALU slot binding.)
        y = 0.5 * y * (1.0 + lax.erf(y * _INV_SQRT2))
        # Two-pass LayerNorm over the embedding dim (f32, numerically stable)
        mean = jnp.mean(y, axis=-1, keepdims=True)
        var = jnp.mean((y - mean) * (y - mean), axis=-1, keepdims=True)
        y = (y - mean) * lax.rsqrt(var + _EPS)
        return y * g_ref[...] + beta_ref[...]

    h = linear_block(h, w1_ref, b1_ref, g1_ref, beta1_ref)
    h = linear_block(h, w2_ref, b2_ref, g2_ref, beta2_ref)

    # residual add vs the ORIGINAL (pre-modulation) input; re-read from VMEM
    # so f32 x is not kept live in vregs across both linear blocks.
    o_ref[...] = (h + x_ref[...].astype(jnp.float32)).astype(o_ref.dtype)


# ---------------------------------------------------------------------------
# Wrapper
# ---------------------------------------------------------------------------
def _round_up(n, m):
    return ((n + m - 1) // m) * m


def _pick_batch_tile(B):
    # MXU-M-filling tiles (multiples of 256), capped by the batch size; small
    # batches use one (8-aligned) tile.  Non-divisible B is handled by padding,
    # so tm never collapses to a tiny/huge degenerate tile.
    if B >= 512:
        return 512
    if B >= 256:
        return 256
    return _round_up(B, 8)


def _vmem_limit_bytes():
    # ~85% of physical VMEM: ~109 MiB on v5e/v6e (128 MiB), ~54 MiB on v7x
    # (64 MiB), leaving headroom for compiler-internal scratch.
    try:
        cap = pltpu.get_tpu_info().vmem_capacity_bytes
    except Exception:
        cap = 64 * 1024 * 1024  # conservative fallback (v7x per-TC)
    return min(int(cap * 0.85), 110 * 1024 * 1024)


# Flipped off at runtime (and cached) if this JAX build rejects Buffered(1)
# on main-pipeline BlockSpecs; the kernel then runs with default buffering.
_USE_BUFFERED_RESIDENT = True


def residual_block(x, t, params, *, time_base=1000):
    """x: (B, D) f32, t: (B,) time steps.  params: see init_params()."""
    global _USE_BUFFERED_RESIDENT
    B, D = x.shape
    Td = params["wt"].shape[0]

    # TODO(synk): sinusoidal_position_embedding is a tiny per-batch scalar
    # precompute kept in plain JAX rather than fused into the kernel.
    t_emb = sinusoidal_position_embedding(t, Td, base=time_base)  # (B, Td) f32

    # cdiv-style batch tiling: pad to a whole number of tm-row tiles, mask the
    # padded rows off by slicing the output back to B.
    tm = _pick_batch_tile(B)
    Bp = _round_up(B, tm)
    if Bp != B:
        x_in = jnp.pad(x, ((0, Bp - B), (0, 0)))
        temb_in = jnp.pad(t_emb, ((0, Bp - B), (0, 0)))
    else:
        x_in, temb_in = x, t_emb
    grid = (Bp // tm,)

    # Weights are already bf16 (cast once in init_params) -> no per-call
    # convert ops / extra HBM traffic before the kernel launches.
    args = (
        x_in, temb_in,
        params["wt"], params["bt"],
        params["w1"], params["b1"], params["g1"], params["beta1"],
        params["w2"], params["b2"], params["g2"], params["beta2"],
    )

    cost = pl.CostEstimate(
        flops=4 * Bp * D * D + 4 * Bp * Td * D,
        transcendentals=2 * Bp * D,
        bytes_accessed=int(sum(a.size * a.dtype.itemsize for a in args)
                           + Bp * D * x.dtype.itemsize),
    )

    def build(use_buffered):
        def tiled(shape):      # batch-tiled operand (pipelined across the grid)
            return pl.BlockSpec(shape, lambda i: (i, 0))

        def resident(shape):   # same block every step -> DMA'd once, stays in VMEM
            if use_buffered:
                # Constant index_map needs no double buffer: halve the
                # resident-weight VMEM footprint (important on v7x / 64 MiB).
                return pl.BlockSpec(shape, lambda i: (0, 0),
                                    pipeline_mode=pl.Buffered(1))
            return pl.BlockSpec(shape, lambda i: (0, 0))

        in_specs = [tiled((tm, D)), tiled((tm, Td))]
        in_specs += [resident(a.shape) for a in args[2:]]

        return pl.pallas_call(
            _residual_block_kernel,
            out_shape=jax.ShapeDtypeStruct((Bp, D), x.dtype),
            grid=grid,
            in_specs=in_specs,
            out_specs=tiled((tm, D)),
            compiler_params=pltpu.CompilerParams(
                dimension_semantics=("parallel",),   # 2 TCs on v7x; no-op on v5e/v6e
                vmem_limit_bytes=_vmem_limit_bytes(),
            ),
            cost_estimate=cost,
        )

    if _USE_BUFFERED_RESIDENT:
        try:
            out = build(use_buffered=True)(*args)
        except Exception:
            _USE_BUFFERED_RESIDENT = False
            out = build(use_buffered=False)(*args)
    else:
        out = build(use_buffered=False)(*args)

    return out[:B] if Bp != B else out


# ---------------------------------------------------------------------------
# Deterministic parameter init (PyTorch nn.Linear-style; synthetic values)
# ---------------------------------------------------------------------------
def init_params(key, embed_dim, time_embedding_dim):
    ks = jax.random.split(key, 8)

    def linear(kw, kb, fan_in, fan_out):
        bound = 1.0 / math.sqrt(fan_in)
        w = jax.random.uniform(kw, (fan_in, fan_out), jnp.float32, -bound, bound)
        b = jax.random.uniform(kb, (1, fan_out), jnp.float32, -bound, bound)
        return w, b

    # time_proj = nn.Linear(Td, 2*D), kept FUSED (scale/shift split in-kernel)
    wt, bt = linear(ks[0], ks[1], time_embedding_dim, 2 * embed_dim)
    w1, b1 = linear(ks[4], ks[5], embed_dim, embed_dim)
    w2, b2 = linear(ks[6], ks[7], embed_dim, embed_dim)
    ones = jnp.ones((1, embed_dim), jnp.float32)    # LayerNorm weight
    zeros = jnp.zeros((1, embed_dim), jnp.float32)  # LayerNorm bias

    bf16 = jnp.bfloat16
    # MXU weight operands are cast to bf16 ONCE here (persistent copies);
    # biases and LayerNorm affine params stay f32.
    return dict(wt=wt.astype(bf16), bt=bt,
                w1=w1.astype(bf16), b1=b1, g1=ones, beta1=zeros,
                w2=w2.astype(bf16), b2=b2, g2=ones, beta2=zeros)


# ---------------------------------------------------------------------------
# Pure-JAX reference with matching matmul precision (bf16 operands, f32 acc)
# ---------------------------------------------------------------------------
def _reference(x, t, p, time_base=1000):
    bf16 = jnp.bfloat16
    D = x.shape[-1]

    def mm(a, w):
        return jnp.dot(a.astype(bf16), w.astype(bf16),
                       preferred_element_type=jnp.float32)

    temb = sinusoidal_position_embedding(t, p["wt"].shape[0], base=time_base)
    ts = mm(temb, p["wt"]) + p["bt"]
    scale, shift = ts[:, :D], ts[:, D:]
    h = x * (scale + 1.0) + shift

    def lb(h, w, b, g, bt):
        y = mm(h, w) + b
        y = 0.5 * y * (1.0 + lax.erf(y * _INV_SQRT2))
        mean = jnp.mean(y, axis=-1, keepdims=True)
        var = jnp.mean((y - mean) ** 2, axis=-1, keepdims=True)
        y = (y - mean) * lax.rsqrt(var + _EPS)
        return y * g + bt

    h = lb(h, p["w1"], p["b1"], p["g1"], p["beta1"])
    h = lb(h, p["w2"], p["b2"], p["g2"], p["beta2"])
    return h + x


if __name__ == "__main__":
    # Small but lane-dense shapes: batch=8, embed_dim=128 (multiple of 128 so
    # output stores and the scale/shift lane-split are tile-aligned), Td=32.
    B, D, TD = 8, 128, 32
    key = jax.random.PRNGKey(0)
    kx, kt, kp = jax.random.split(key, 3)

    x = jax.random.normal(kx, (B, D), jnp.float32)
    t = jax.random.randint(kt, (B,), 0, 1000).astype(jnp.float32)
    params = init_params(kp, D, TD)

    out = jax.block_until_ready(residual_block(x, t, params))
    ref = _reference(x, t, params)

    assert out.shape == (B, D)
    assert jnp.allclose(out, ref, atol=5e-3, rtol=5e-3), "mismatch vs reference"

    print("KERNEL_OK")
</pallas_src>

<mosaic_0001>
module attributes {stable_mosaic.version = 11 : i64} {
  func.func @_residual_block_kernel(%arg0: i32, %arg1: memref<8x128xf32, #tpu.memory_space<vmem>>, %arg2: memref<8x32xf32, #tpu.memory_space<vmem>>, %arg3: memref<32x256xbf16, #tpu.memory_space<vmem>>, %arg4: memref<1x256xf32, #tpu.memory_space<vmem>>, %arg5: memref<128x128xbf16, #tpu.memory_space<vmem>>, %arg6: memref<1x128xf32, #tpu.memory_space<vmem>>, %arg7: memref<1x128xf32, #tpu.memory_space<vmem>>, %arg8: memref<1x128xf32, #tpu.memory_space<vmem>>, %arg9: memref<128x128xbf16, #tpu.memory_space<vmem>>, %arg10: memref<1x128xf32, #tpu.memory_space<vmem>>, %arg11: memref<1x128xf32, #tpu.memory_space<vmem>>, %arg12: memref<1x128xf32, #tpu.memory_space<vmem>>, %arg13: memref<8x128xf32, #tpu.memory_space<vmem>>) attributes {dimension_semantics = [#tpu.dimension_semantics<parallel>], iteration_bounds = array<i64: 1>, scalar_prefetch = 0 : i64, scratch_operands = 0 : i64, tpu.core_type = #tpu.core_type<tc>, window_params = [{transform_indices = @transform_0, window_bounds = array<i64: 8, 128>}, {transform_indices = @transform_1, window_bounds = array<i64: 8, 32>}, {pipeline_mode = #tpu.pipeline_mode<synchronous>, transform_indices = @transform_2, window_bounds = array<i64: 32, 256>}, {pipeline_mode = #tpu.pipeline_mode<synchronous>, transform_indices = @transform_3, window_bounds = array<i64: 1, 256>}, {pipeline_mode = #tpu.pipeline_mode<synchronous>, transform_indices = @transform_4, window_bounds = array<i64: 128, 128>}, {pipeline_mode = #tpu.pipeline_mode<synchronous>, transform_indices = @transform_5, window_bounds = array<i64: 1, 128>}, {pipeline_mode = #tpu.pipeline_mode<synchronous>, transform_indices = @transform_6, window_bounds = array<i64: 1, 128>}, {pipeline_mode = #tpu.pipeline_mode<synchronous>, transform_indices = @transform_7, window_bounds = array<i64: 1, 128>}, {pipeline_mode = #tpu.pipeline_mode<synchronous>, transform_indices = @transform_8, window_bounds = array<i64: 128, 128>}, {pipeline_mode = #tpu.pipeline_mode<synchronous>, transform_indices = @transform_9, window_bounds = array<i64: 1, 128>}, {pipeline_mode = #tpu.pipeline_mode<synchronous>, transform_indices = @transform_10, window_bounds = array<i64: 1, 128>}, {pipeline_mode = #tpu.pipeline_mode<synchronous>, transform_indices = @transform_11, window_bounds = array<i64: 1, 128>}, {transform_indices = @transform_12, window_bounds = array<i64: 8, 128>}]} {
    %c0 = arith.constant 0 : index
    %c0_0 = arith.constant 0 : index
    %0 = vector.load %arg2[%c0, %c0_0] : memref<8x32xf32, #tpu.memory_space<vmem>>, vector<8x32xf32>
    %1 = arith.truncf %0 : vector<8x32xf32> to vector<8x32xbf16>
    %c0_1 = arith.constant 0 : index
    %c0_2 = arith.constant 0 : index
    %2 = vector.load %arg3[%c0_1, %c0_2] : memref<32x256xbf16, #tpu.memory_space<vmem>>, vector<32x256xbf16>
    %cst = arith.constant dense<0.000000e+00> : vector<8x256xf32>
    %3 = tpu.matmul %1, %2, %cst {dimension_numbers = #tpu.dot_dimension_numbers<[1], [0], [0], [1], [0, 0, 1, 1], [], []>} : vector<8x32xbf16>, vector<32x256xbf16>, vector<8x256xf32> -> vector<8x256xf32>
    %c0_3 = arith.constant 0 : index
    %c0_4 = arith.constant 0 : index
    %4 = vector.load %arg4[%c0_3, %c0_4] : memref<1x256xf32, #tpu.memory_space<vmem>>, vector<1x256xf32>
    %5 = vector.broadcast %4 : vector<1x256xf32> to vector<8x256xf32>
    %6 = arith.addf %3, %5 : vector<8x256xf32>
    %7 = vector.extract_strided_slice %6 {offsets = [0, 0], sizes = [8, 128], strides = [1, 1]} : vector<8x256xf32> to vector<8x128xf32>
    %8 = vector.extract_strided_slice %6 {offsets = [0, 128], sizes = [8, 128], strides = [1, 1]} : vector<8x256xf32> to vector<8x128xf32>
    %c0_5 = arith.constant 0 : index
    %c0_6 = arith.constant 0 : index
    %9 = vector.load %arg1[%c0_5, %c0_6] : memref<8x128xf32, #tpu.memory_space<vmem>>, vector<8x128xf32>
    %cst_7 = arith.constant 1.000000e+00 : f32
    %10 = vector.broadcast %cst_7 : f32 to vector<8x128xf32>
    %11 = arith.addf %7, %10 : vector<8x128xf32>
    %12 = arith.mulf %9, %11 : vector<8x128xf32>
    %13 = arith.addf %12, %8 : vector<8x128xf32>
    %14 = arith.truncf %13 : vector<8x128xf32> to vector<8x128xbf16>
    %c0_8 = arith.constant 0 : index
    %c0_9 = arith.constant 0 : index
    %15 = vector.load %arg5[%c0_8, %c0_9] : memref<128x128xbf16, #tpu.memory_space<vmem>>, vector<128x128xbf16>
    %cst_10 = arith.constant dense<0.000000e+00> : vector<8x128xf32>
    %16 = tpu.matmul %14, %15, %cst_10 {dimension_numbers = #tpu.dot_dimension_numbers<[1], [0], [0], [1], [0, 0, 1, 1], [], []>} : vector<8x128xbf16>, vector<128x128xbf16>, vector<8x128xf32> -> vector<8x128xf32>
    %c0_11 = arith.constant 0 : index
    %c0_12 = arith.constant 0 : index
    %17 = vector.load %arg6[%c0_11, %c0_12] : memref<1x128xf32, #tpu.memory_space<vmem>>, vector<1x128xf32>
    %18 = vector.broadcast %17 : vector<1x128xf32> to vector<8x128xf32>
    %19 = arith.addf %16, %18 : vector<8x128xf32>
    %cst_13 = arith.constant 5.000000e-01 : f32
    %20 = vector.broadcast %cst_13 : f32 to vector<8x128xf32>
    %21 = arith.mulf %20, %19 : vector<8x128xf32>
    %cst_14 = arith.constant 0.707106769 : f32
    %22 = vector.broadcast %cst_14 : f32 to vector<8x128xf32>
    %23 = arith.mulf %19, %22 : vector<8x128xf32>
    %24 = math.erf %23 : vector<8x128xf32>
    %cst_15 = arith.constant 1.000000e+00 : f32
    %25 = vector.broadcast %cst_15 : f32 to vector<8x128xf32>
    %26 = arith.addf %25, %24 : vector<8x128xf32>
    %27 = arith.mulf %21, %26 : vector<8x128xf32>
    %cst_16 = arith.constant dense<0.000000e+00> : vector<8xf32>
    %28 = vector.multi_reduction <add>, %27, %cst_16 [1] : vector<8x128xf32> to vector<8xf32>
    %29 = vector.shape_cast %28 : vector<8xf32> to vector<8x1xf32>
    %cst_17 = arith.constant 1.280000e+02 : f32
    %30 = vector.broadcast %cst_17 : f32 to vector<8x1xf32>
    %31 = arith.divf %29, %30 : vector<8x1xf32>
    %32 = vector.broadcast %31 : vector<8x1xf32> to vector<8x128xf32>
    %33 = arith.subf %27, %32 : vector<8x128xf32>
    %34 = vector.broadcast %31 : vector<8x1xf32> to vector<8x128xf32>
    %35 = arith.subf %27, %34 : vector<8x128xf32>
    %36 = arith.mulf %33, %35 : vector<8x128xf32>
    %cst_18 = arith.constant dense<0.000000e+00> : vector<8xf32>
    %37 = vector.multi_reduction <add>, %36, %cst_18 [1] : vector<8x128xf32> to vector<8xf32>
    %38 = vector.shape_cast %37 : vector<8xf32> to vector<8x1xf32>
    %cst_19 = arith.constant 1.280000e+02 : f32
    %39 = vector.broadcast %cst_19 : f32 to vector<8x1xf32>
    %40 = arith.divf %38, %39 : vector<8x1xf32>
    %41 = vector.broadcast %31 : vector<8x1xf32> to vector<8x128xf32>
    %42 = arith.subf %27, %41 : vector<8x128xf32>
    %cst_20 = arith.constant 9.99999974E-6 : f32
    %43 = vector.broadcast %cst_20 : f32 to vector<8x1xf32>
    %44 = arith.addf %40, %43 : vector<8x1xf32>
    %45 = math.rsqrt %44 : vector<8x1xf32>
    %46 = vector.broadcast %45 : vector<8x1xf32> to vector<8x128xf32>
    %47 = arith.mulf %42, %46 : vector<8x128xf32>
    %c0_21 = arith.constant 0 : index
    %c0_22 = arith.constant 0 : index
    %48 = vector.load %arg7[%c0_21, %c0_22] : memref<1x128xf32, #tpu.memory_space<vmem>>, vector<1x128xf32>
    %49 = vector.broadcast %48 : vector<1x128xf32> to vector<8x128xf32>
    %50 = arith.mulf %47, %49 : vector<8x128xf32>
    %c0_23 = arith.constant 0 : index
    %c0_24 = arith.constant 0 : index
    %51 = vector.load %arg8[%c0_23, %c0_24] : memref<1x128xf32, #tpu.memory_space<vmem>>, vector<1x128xf32>
    %52 = vector.broadcast %51 : vector<1x128xf32> to vector<8x128xf32>
    %53 = arith.addf %50, %52 : vector<8x128xf32>
    %54 = arith.truncf %53 : vector<8x128xf32> to vector<8x128xbf16>
    %c0_25 = arith.constant 0 : index
    %c0_26 = arith.constant 0 : index
    %55 = vector.load %arg9[%c0_25, %c0_26] : memref<128x128xbf16, #tpu.memory_space<vmem>>, vector<128x128xbf16>
    %cst_27 = arith.constant dense<0.000000e+00> : vector<8x128xf32>
    %56 = tpu.matmul %54, %55, %cst_27 {dimension_numbers = #tpu.dot_dimension_numbers<[1], [0], [0], [1], [0, 0, 1, 1], [], []>} : vector<8x128xbf16>, vector<128x128xbf16>, vector<8x128xf32> -> vector<8x128xf32>
    %c0_28 = arith.constant 0 : index
    %c0_29 = arith.constant 0 : index
    %57 = vector.load %arg10[%c0_28, %c0_29] : memref<1x128xf32, #tpu.memory_space<vmem>>, vector<1x128xf32>
    %58 = vector.broadcast %57 : vector<1x128xf32> to vector<8x128xf32>
    %59 = arith.addf %56, %58 : vector<8x128xf32>
    %cst_30 = arith.constant 5.000000e-01 : f32
    %60 = vector.broadcast %cst_30 : f32 to vector<8x128xf32>
    %61 = arith.mulf %60, %59 : vector<8x128xf32>
    %cst_31 = arith.constant 0.707106769 : f32
    %62 = vector.broadcast %cst_31 : f32 to vector<8x128xf32>
    %63 = arith.mulf %59, %62 : vector<8x128xf32>
    %64 = math.erf %63 : vector<8x128xf32>
    %cst_32 = arith.constant 1.000000e+00 : f32
    %65 = vector.broadcast %cst_32 : f32 to vector<8x128xf32>
    %66 = arith.addf %65, %64 : vector<8x128xf32>
    %67 = arith.mulf %61, %66 : vector<8x128xf32>
    %cst_33 = arith.constant dense<0.000000e+00> : vector<8xf32>
    %68 = vector.multi_reduction <add>, %67, %cst_33 [1] : vector<8x128xf32> to vector<8xf32>
    %69 = vector.shape_cast %68 : vector<8xf32> to vector<8x1xf32>
    %cst_34 = arith.constant 1.280000e+02 : f32
    %70 = vector.broadcast %cst_34 : f32 to vector<8x1xf32>
    %71 = arith.divf %69, %70 : vector<8x1xf32>
    %72 = vector.broadcast %71 : vector<8x1xf32> to vector<8x128xf32>
    %73 = arith.subf %67, %72 : vector<8x128xf32>
    %74 = vector.broadcast %71 : vector<8x1xf32> to vector<8x128xf32>
    %75 = arith.subf %67, %74 : vector<8x128xf32>
    %76 = arith.mulf %73, %75 : vector<8x128xf32>
    %cst_35 = arith.constant dense<0.000000e+00> : vector<8xf32>
    %77 = vector.multi_reduction <add>, %76, %cst_35 [1] : vector<8x128xf32> to vector<8xf32>
    %78 = vector.shape_cast %77 : vector<8xf32> to vector<8x1xf32>
    %cst_36 = arith.constant 1.280000e+02 : f32
    %79 = vector.broadcast %cst_36 : f32 to vector<8x1xf32>
    %80 = arith.divf %78, %79 : vector<8x1xf32>
    %81 = vector.broadcast %71 : vector<8x1xf32> to vector<8x128xf32>
    %82 = arith.subf %67, %81 : vector<8x128xf32>
    %cst_37 = arith.constant 9.99999974E-6 : f32
    %83 = vector.broadcast %cst_37 : f32 to vector<8x1xf32>
    %84 = arith.addf %80, %83 : vector<8x1xf32>
    %85 = math.rsqrt %84 : vector<8x1xf32>
    %86 = vector.broadcast %85 : vector<8x1xf32> to vector<8x128xf32>
    %87 = arith.mulf %82, %86 : vector<8x128xf32>
    %c0_38 = arith.constant 0 : index
    %c0_39 = arith.constant 0 : index
    %88 = vector.load %arg11[%c0_38, %c0_39] : memref<1x128xf32, #tpu.memory_space<vmem>>, vector<1x128xf32>
    %89 = vector.broadcast %88 : vector<1x128xf32> to vector<8x128xf32>
    %90 = arith.mulf %87, %89 : vector<8x128xf32>
    %c0_40 = arith.constant 0 : index
    %c0_41 = arith.constant 0 : index
    %91 = vector.load %arg12[%c0_40, %c0_41] : memref<1x128xf32, #tpu.memory_space<vmem>>, vector<1x128xf32>
    %92 = vector.broadcast %91 : vector<1x128xf32> to vector<8x128xf32>
    %93 = arith.addf %90, %92 : vector<8x128xf32>
    %c0_42 = arith.constant 0 : index
    %c0_43 = arith.constant 0 : index
    %94 = vector.load %arg1[%c0_42, %c0_43] : memref<8x128xf32, #tpu.memory_space<vmem>>, vector<8x128xf32>
    %95 = arith.addf %93, %94 : vector<8x128xf32>
    %c0_44 = arith.constant 0 : index
    %c0_45 = arith.constant 0 : index
    %96 = vector.load %arg13[%c0_44, %c0_45] : memref<8x128xf32, #tpu.memory_space<vmem>>, vector<8x128xf32>
    tpu.vector_store %arg13[%c0_44, %c0_45], %95 {strides = array<i32>} : memref<8x128xf32, #tpu.memory_space<vmem>>, vector<8x128xf32>,
    return
  }
  func.func @transform_0(%arg0: i32) -> (i32, i32) {
    %c0_i32 = arith.constant 0 : i32
    %c0_i32_0 = arith.constant 0 : i32
    return %arg0, %c0_i32 : i32, i32
  }
  func.func @transform_1(%arg0: i32) -> (i32, i32) {
    %c0_i32 = arith.constant 0 : i32
    %c0_i32_0 = arith.constant 0 : i32
    return %arg0, %c0_i32 : i32, i32
  }
  func.func @transform_2(%arg0: i32) -> (i32, i32) {
    %c0_i32 = arith.constant 0 : i32
    %c0_i32_0 = arith.constant 0 : i32
    %c0_i32_1 = arith.constant 0 : i32
    return %c0_i32, %c0_i32_0 : i32, i32
  }
  func.func @transform_3(%arg0: i32) -> (i32, i32) {
    %c0_i32 = arith.constant 0 : i32
    %c0_i32_0 = arith.constant 0 : i32
    %c0_i32_1 = arith.constant 0 : i32
    return %c0_i32, %c0_i32_0 : i32, i32
  }
  func.func @transform_4(%arg0: i32) -> (i32, i32) {
    %c0_i32 = arith.constant 0 : i32
    %c0_i32_0 = arith.constant 0 : i32
    %c0_i32_1 = arith.constant 0 : i32
    return %c0_i32, %c0_i32_0 : i32, i32
  }
  func.func @transform_5(%arg0: i32) -> (i32, i32) {
    %c0_i32 = arith.constant 0 : i32
    %c0_i32_0 = arith.constant 0 : i32
    %c0_i32_1 = arith.constant 0 : i32
    return %c0_i32, %c0_i32_0 : i32, i32
  }
  func.func @transform_6(%arg0: i32) -> (i32, i32) {
    %c0_i32 = arith.constant 0 : i32
    %c0_i32_0 = arith.constant 0 : i32
    %c0_i32_1 = arith.constant 0 : i32
    return %c0_i32, %c0_i32_0 : i32, i32
  }
  func.func @transform_7(%arg0: i32) -> (i32, i32) {
    %c0_i32 = arith.constant 0 : i32
    %c0_i32_0 = arith.constant 0 : i32
    %c0_i32_1 = arith.constant 0 : i32
    return %c0_i32, %c0_i32_0 : i32, i32
  }
  func.func @transform_8(%arg0: i32) -> (i32, i32) {
    %c0_i32 = arith.constant 0 : i32
    %c0_i32_0 = arith.constant 0 : i32
    %c0_i32_1 = arith.constant 0 : i32
    return %c0_i32, %c0_i32_0 : i32, i32
  }
  func.func @transform_9(%arg0: i32) -> (i32, i32) {
    %c0_i32 = arith.constant 0 : i32
    %c0_i32_0 = arith.constant 0 : i32
    %c0_i32_1 = arith.constant 0 : i32
    return %c0_i32, %c0_i32_0 : i32, i32
  }
  func.func @transform_10(%arg0: i32) -> (i32, i32) {
    %c0_i32 = arith.constant 0 : i32
    %c0_i32_0 = arith.constant 0 : i32
    %c0_i32_1 = arith.constant 0 : i32
    return %c0_i32, %c0_i32_0 : i32, i32
  }
  func.func @transform_11(%arg0: i32) -> (i32, i32) {
    %c0_i32 = arith.constant 0 : i32
    %c0_i32_0 = arith.constant 0 : i32
    %c0_i32_1 = arith.constant 0 : i32
    return %c0_i32, %c0_i32_0 : i32, i32
  }
  func.func @transform_12(%arg0: i32) -> (i32, i32) {
    %c0_i32 = arith.constant 0 : i32
    %c0_i32_0 = arith.constant 0 : i32
    return %arg0, %c0_i32 : i32, i32
  }
}

module attributes {stable_mosaic.version = 11 : i64} {
  func.func @_residual_block_kernel(%arg0: i32, %arg1: memref<8x128xf32, #tpu.memory_space<vmem>>, %arg2: memref<8x32xf32, #tpu.memory_space<vmem>>, %arg3: memref<32x256xbf16, #tpu.memory_space<vmem>>, %arg4: memref<1x256xf32, #tpu.memory_space<vmem>>, %arg5: memref<128x128xbf16, #tpu.memory_space<vmem>>, %arg6: memref<1x128xf32, #tpu.memory_space<vmem>>, %arg7: memref<1x128xf32, #tpu.memory_space<vmem>>, %arg8: memref<1x128xf32, #tpu.memory_space<vmem>>, %arg9: memref<128x128xbf16, #tpu.memory_space<vmem>>, %arg10: memref<1x128xf32, #tpu.memory_space<vmem>>, %arg11: memref<1x128xf32, #tpu.memory_space<vmem>>, %arg12: memref<1x128xf32, #tpu.memory_space<vmem>>, %arg13: memref<8x128xf32, #tpu.memory_space<vmem>>) attributes {dimension_semantics = [#tpu.dimension_semantics<parallel>], iteration_bounds = array<i64: 1>, scalar_prefetch = 0 : i64, scratch_operands = 0 : i64, tpu.core_type = #tpu.core_type<tc>, window_params = [{transform_indices = @transform_0, window_bounds = array<i64: 8, 128>}, {transform_indices = @transform_1, window_bounds = array<i64: 8, 32>}, {pipeline_mode = #tpu.pipeline_mode<synchronous>, transform_indices = @transform_2, window_bounds = array<i64: 32, 256>}, {pipeline_mode = #tpu.pipeline_mode<synchronous>, transform_indices = @transform_3, window_bounds = array<i64: 1, 256>}, {pipeline_mode = #tpu.pipeline_mode<synchronous>, transform_indices = @transform_4, window_bounds = array<i64: 128, 128>}, {pipeline_mode = #tpu.pipeline_mode<synchronous>, transform_indices = @transform_5, window_bounds = array<i64: 1, 128>}, {pipeline_mode = #tpu.pipeline_mode<synchronous>, transform_indices = @transform_6, window_bounds = array<i64: 1, 128>}, {pipeline_mode = #tpu.pipeline_mode<synchronous>, transform_indices = @transform_7, window_bounds = array<i64: 1, 128>}, {pipeline_mode = #tpu.pipeline_mode<synchronous>, transform_indices = @transform_8, window_bounds = array<i64: 128, 128>}, {pipeline_mode = #tpu.pipeline_mode<synchronous>, transform_indices = @transform_9, window_bounds = array<i64: 1, 128>}, {pipeline_mode = #tpu.pipeline_mode<synchronous>, transform_indices = @transform_10, window_bounds = array<i64: 1, 128>}, {pipeline_mode = #tpu.pipeline_mode<synchronous>, transform_indices = @transform_11, window_bounds = array<i64: 1, 128>}, {transform_indices = @transform_12, window_bounds = array<i64: 8, 128>}]} {
    %c0 = arith.constant 0 : index
    %c0_0 = arith.constant 0 : index
    %0 = vector.load %arg2[%c0, %c0_0] : memref<8x32xf32, #tpu.memory_space<vmem>>, vector<8x32xf32>
    %1 = arith.truncf %0 : vector<8x32xf32> to vector<8x32xbf16>
    %c0_1 = arith.constant 0 : index
    %c0_2 = arith.constant 0 : index
    %2 = vector.load %arg3[%c0_1, %c0_2] : memref<32x256xbf16, #tpu.memory_space<vmem>>, vector<32x256xbf16>
    %cst = arith.constant dense<0.000000e+00> : vector<8x256xf32>
    %3 = tpu.matmul %1, %2, %cst {dimension_numbers = #tpu.dot_dimension_numbers<[1], [0], [0], [1], [0, 0, 1, 1], [], []>} : vector<8x32xbf16>, vector<32x256xbf16>, vector<8x256xf32> -> vector<8x256xf32>
    %c0_3 = arith.constant 0 : index
    %c0_4 = arith.constant 0 : index
    %4 = vector.load %arg4[%c0_3, %c0_4] : memref<1x256xf32, #tpu.memory_space<vmem>>, vector<1x256xf32>
    %5 = vector.broadcast %4 : vector<1x256xf32> to vector<8x256xf32>
    %6 = arith.addf %3, %5 : vector<8x256xf32>
    %7 = vector.extract_strided_slice %6 {offsets = [0, 0], sizes = [8, 128], strides = [1, 1]} : vector<8x256xf32> to vector<8x128xf32>
    %8 = vector.extract_strided_slice %6 {offsets = [0, 128], sizes = [8, 128], strides = [1, 1]} : vector<8x256xf32> to vector<8x128xf32>
    %c0_5 = arith.constant 0 : index
    %c0_6 = arith.constant 0 : index
    %9 = vector.load %arg1[%c0_5, %c0_6] : memref<8x128xf32, #tpu.memory_space<vmem>>, vector<8x128xf32>
    %cst_7 = arith.constant 1.000000e+00 : f32
    %10 = vector.broadcast %cst_7 : f32 to vector<8x128xf32>
    %11 = arith.addf %7, %10 : vector<8x128xf32>
    %12 = arith.mulf %9, %11 : vector<8x128xf32>
    %13 = arith.addf %12, %8 : vector<8x128xf32>
    %14 = arith.truncf %13 : vector<8x128xf32> to vector<8x128xbf16>
    %c0_8 = arith.constant 0 : index
    %c0_9 = arith.constant 0 : index
    %15 = vector.load %arg5[%c0_8, %c0_9] : memref<128x128xbf16, #tpu.memory_space<vmem>>, vector<128x128xbf16>
    %cst_10 = arith.constant dense<0.000000e+00> : vector<8x128xf32>
    %16 = tpu.matmul %14, %15, %cst_10 {dimension_numbers = #tpu.dot_dimension_numbers<[1], [0], [0], [1], [0, 0, 1, 1], [], []>} : vector<8x128xbf16>, vector<128x128xbf16>, vector<8x128xf32> -> vector<8x128xf32>
    %c0_11 = arith.constant 0 : index
    %c0_12 = arith.constant 0 : index
    %17 = vector.load %arg6[%c0_11, %c0_12] : memref<1x128xf32, #tpu.memory_space<vmem>>, vector<1x128xf32>
    %18 = vector.broadcast %17 : vector<1x128xf32> to vector<8x128xf32>
    %19 = arith.addf %16, %18 : vector<8x128xf32>
    %cst_13 = arith.constant 5.000000e-01 : f32
    %20 = vector.broadcast %cst_13 : f32 to vector<8x128xf32>
    %21 = arith.mulf %20, %19 : vector<8x128xf32>
    %cst_14 = arith.constant 0.707106769 : f32
    %22 = vector.broadcast %cst_14 : f32 to vector<8x128xf32>
    %23 = arith.mulf %19, %22 : vector<8x128xf32>
    %24 = math.erf %23 : vector<8x128xf32>
    %cst_15 = arith.constant 1.000000e+00 : f32
    %25 = vector.broadcast %cst_15 : f32 to vector<8x128xf32>
    %26 = arith.addf %25, %24 : vector<8x128xf32>
    %27 = arith.mulf %21, %26 : vector<8x128xf32>
    %cst_16 = arith.constant dense<0.000000e+00> : vector<8xf32>
    %28 = vector.multi_reduction <add>, %27, %cst_16 [1] : vector<8x128xf32> to vector<8xf32>
    %29 = vector.shape_cast %28 : vector<8xf32> to vector<8x1xf32>
    %cst_17 = arith.constant 1.280000e+02 : f32
    %30 = vector.broadcast %cst_17 : f32 to vector<8x1xf32>
    %31 = arith.divf %29, %30 : vector<8x1xf32>
    %32 = vector.broadcast %31 : vector<8x1xf32> to vector<8x128xf32>
    %33 = arith.subf %27, %32 : vector<8x128xf32>
    %34 = vector.broadcast %31 : vector<8x1xf32> to vector<8x128xf32>
    %35 = arith.subf %27, %34 : vector<8x128xf32>
    %36 = arith.mulf %33, %35 : vector<8x128xf32>
    %cst_18 = arith.constant dense<0.000000e+00> : vector<8xf32>
    %37 = vector.multi_reduction <add>, %36, %cst_18 [1] : vector<8x128xf32> to vector<8xf32>
    %38 = vector.shape_cast %37 : vector<8xf32> to vector<8x1xf32>
    %cst_19 = arith.constant 1.280000e+02 : f32
    %39 = vector.broadcast %cst_19 : f32 to vector<8x1xf32>
    %40 = arith.divf %38, %39 : vector<8x1xf32>
    %41 = vector.broadcast %31 : vector<8x1xf32> to vector<8x128xf32>
    %42 = arith.subf %27, %41 : vector<8x128xf32>
    %cst_20 = arith.constant 9.99999974E-6 : f32
    %43 = vector.broadcast %cst_20 : f32 to vector<8x1xf32>
    %44 = arith.addf %40, %43 : vector<8x1xf32>
    %45 = math.rsqrt %44 : vector<8x1xf32>
    %46 = vector.broadcast %45 : vector<8x1xf32> to vector<8x128xf32>
    %47 = arith.mulf %42, %46 : vector<8x128xf32>
    %c0_21 = arith.constant 0 : index
    %c0_22 = arith.constant 0 : index
    %48 = vector.load %arg7[%c0_21, %c0_22] : memref<1x128xf32, #tpu.memory_space<vmem>>, vector<1x128xf32>
    %49 = vector.broadcast %48 : vector<1x128xf32> to vector<8x128xf32>
    %50 = arith.mulf %47, %49 : vector<8x128xf32>
    %c0_23 = arith.constant 0 : index
    %c0_24 = arith.constant 0 : index
    %51 = vector.load %arg8[%c0_23, %c0_24] : memref<1x128xf32, #tpu.memory_space<vmem>>, vector<1x128xf32>
    %52 = vector.broadcast %51 : vector<1x128xf32> to vector<8x128xf32>
    %53 = arith.addf %50, %52 : vector<8x128xf32>
    %54 = arith.truncf %53 : vector<8x128xf32> to vector<8x128xbf16>
    %c0_25 = arith.constant 0 : index
    %c0_26 = arith.constant 0 : index
    %55 = vector.load %arg9[%c0_25, %c0_26] : memref<128x128xbf16, #tpu.memory_space<vmem>>, vector<128x128xbf16>
    %cst_27 = arith.constant dense<0.000000e+00> : vector<8x128xf32>
    %56 = tpu.matmul %54, %55, %cst_27 {dimension_numbers = #tpu.dot_dimension_numbers<[1], [0], [0], [1], [0, 0, 1, 1], [], []>} : vector<8x128xbf16>, vector<128x128xbf16>, vector<8x128xf32> -> vector<8x128xf32>
    %c0_28 = arith.constant 0 : index
    %c0_29 = arith.constant 0 : index
    %57 = vector.load %arg10[%c0_28, %c0_29] : memref<1x128xf32, #tpu.memory_space<vmem>>, vector<1x128xf32>
    %58 = vector.broadcast %57 : vector<1x128xf32> to vector<8x128xf32>
    %59 = arith.addf %56, %58 : vector<8x128xf32>
    %cst_30 = arith.constant 5.000000e-01 : f32
    %60 = vector.broadcast %cst_30 : f32 to vector<8x128xf32>
    %61 = arith.mulf %60, %59 : vector<8x128xf32>
    %cst_31 = arith.constant 0.707106769 : f32
    %62 = vector.broadcast %cst_31 : f32 to vector<8x128xf32>
    %63 = arith.mulf %59, %62 : vector<8x128xf32>
    %64 = math.erf %63 : vector<8x128xf32>
    %cst_32 = arith.constant 1.000000e+00 : f32
    %65 = vector.broadcast %cst_32 : f32 to vector<8x128xf32>
    %66 = arith.addf %65, %64 : vector<8x128xf32>
    %67 = arith.mulf %61, %66 : vector<8x128xf32>
    %cst_33 = arith.constant dense<0.000000e+00> : vector<8xf32>
    %68 = vector.multi_reduction <add>, %67, %cst_33 [1] : vector<8x128xf32> to vector<8xf32>
    %69 = vector.shape_cast %68 : vector<8xf32> to vector<8x1xf32>
    %cst_34 = arith.constant 1.280000e+02 : f32
    %70 = vector.broadcast %cst_34 : f32 to vector<8x1xf32>
    %71 = arith.divf %69, %70 : vector<8x1xf32>
    %72 = vector.broadcast %71 : vector<8x1xf32> to vector<8x128xf32>
    %73 = arith.subf %67, %72 : vector<8x128xf32>
    %74 = vector.broadcast %71 : vector<8x1xf32> to vector<8x128xf32>
    %75 = arith.subf %67, %74 : vector<8x128xf32>
    %76 = arith.mulf %73, %75 : vector<8x128xf32>
    %cst_35 = arith.constant dense<0.000000e+00> : vector<8xf32>
    %77 = vector.multi_reduction <add>, %76, %cst_35 [1] : vector<8x128xf32> to vector<8xf32>
    %78 = vector.shape_cast %77 : vector<8xf32> to vector<8x1xf32>
    %cst_36 = arith.constant 1.280000e+02 : f32
    %79 = vector.broadcast %cst_36 : f32 to vector<8x1xf32>
    %80 = arith.divf %78, %79 : vector<8x1xf32>
    %81 = vector.broadcast %71 : vector<8x1xf32> to vector<8x128xf32>
    %82 = arith.subf %67, %81 : vector<8x128xf32>
    %cst_37 = arith.constant 9.99999974E-6 : f32
    %83 = vector.broadcast %cst_37 : f32 to vector<8x1xf32>
    %84 = arith.addf %80, %83 : vector<8x1xf32>
    %85 = math.rsqrt %84 : vector<8x1xf32>
    %86 = vector.broadcast %85 : vector<8x1xf32> to vector<8x128xf32>
    %87 = arith.mulf %82, %86 : vector<8x128xf32>
    %c0_38 = arith.constant 0 : index
    %c0_39 = arith.constant 0 : index
    %88 = vector.load %arg11[%c0_38, %c0_39] : memref<1x128xf32, #tpu.memory_space<vmem>>, vector<1x128xf32>
    %89 = vector.broadcast %88 : vector<1x128xf32> to vector<8x128xf32>
    %90 = arith.mulf %87, %89 : vector<8x128xf32>
    %c0_40 = arith.constant 0 : index
    %c0_41 = arith.constant 0 : index
    %91 = vector.load %arg12[%c0_40, %c0_41] : memref<1x128xf32, #tpu.memory_space<vmem>>, vector<1x128xf32>
    %92 = vector.broadcast %91 : vector<1x128xf32> to vector<8x128xf32>
    %93 = arith.addf %90, %92 : vector<8x128xf32>
    %c0_42 = arith.constant 0 : index
    %c0_43 = arith.constant 0 : index
    %94 = vector.load %arg1[%c0_42, %c0_43] : memref<8x128xf32, #tpu.memory_space<vmem>>, vector<8x128xf32>
    %95 = arith.addf %93, %94 : vector<8x128xf32>
    %c0_44 = arith.constant 0 : index
    %c0_45 = arith.constant 0 : index
    %96 = vector.load %arg13[%c0_44, %c0_45] : memref<8x128xf32, #tpu.memory_space<vmem>>, vector<8x128xf32>
    tpu.vector_store %arg13[%c0_44, %c0_45], %95 {strides = array<i32>} : memref<8x128xf32, #tpu.memory_space<vmem>>, vector<8x128xf32>,
    return
  }
  func.func @transform_0(%arg0: i32) -> (i32, i32) {
    %c0_i32 = arith.constant 0 : i32
    %c0_i32_0 = arith.constant 0 : i32
    return %arg0, %c0_i32 : i32, i32
  }
  func.func @transform_1(%arg0: i32) -> (i32, i32) {
    %c0_i32 = arith.constant 0 : i32
    %c0_i32_0 = arith.constant 0 : i32
    return %arg0, %c0_i32 : i32, i32
  }
  func.func @transform_2(%arg0: i32) -> (i32, i32) {
    %c0_i32 = arith.constant 0 : i32
    %c0_i32_0 = arith.constant 0 : i32
    %c0_i32_1 = arith.constant 0 : i32
    return %c0_i32, %c0_i32_0 : i32, i32
  }
  func.func @transform_3(%arg0: i32) -> (i32, i32) {
    %c0_i32 = arith.constant 0 : i32
    %c0_i32_0 = arith.constant 0 : i32
    %c0_i32_1 = arith.constant 0 : i32
    return %c0_i32, %c0_i32_0 : i32, i32
  }
  func.func @transform_4(%arg0: i32) -> (i32, i32) {
    %c0_i32 = arith.constant 0 : i32
    %c0_i32_0 = arith.constant 0 : i32
    %c0_i32_1 = arith.constant 0 : i32
    return %c0_i32, %c0_i32_0 : i32, i32
  }
  func.func @transform_5(%arg0: i32) -> (i32, i32) {
    %c0_i32 = arith.constant 0 : i32
    %c0_i32_0 = arith.constant 0 : i32
    %c0_i32_1 = arith.constant 0 : i32
    return %c0_i32, %c0_i32_0 : i32, i32
  }
  func.func @transform_6(%arg0: i32) -> (i32, i32) {
    %c0_i32 = arith.constant 0 : i32
    %c0_i32_0 = arith.constant 0 : i32
    %c0_i32_1 = arith.constant 0 : i32
    return %c0_i32, %c0_i32_0 : i32, i32
  }
  func.func @transform_7(%arg0: i32) -> (i32, i32) {
    %c0_i32 = arith.constant 0 : i32
    %c0_i32_0 = arith.constant 0 : i32
    %c0_i32_1 = arith.constant 0 : i32
    return %c0_i32, %c0_i32_0 : i32, i32
  }
  func.func @transform_8(%arg0: i32) -> (i32, i32) {
    %c0_i32 = arith.constant 0 : i32
    %c0_i32_0 = arith.constant 0 : i32
    %c0_i32_1 = arith.constant 0 : i32
    return %c0_i32, %c0_i32_0 : i32, i32
  }
  func.func @transform_9(%arg0: i32) -> (i32, i32) {
    %c0_i32 = arith.constant 0 : i32
    %c0_i32_0 = arith.constant 0 : i32
    %c0_i32_1 = arith.constant 0 : i32
    return %c0_i32, %c0_i32_0 : i32, i32
  }
  func.func @transform_10(%arg0: i32) -> (i32, i32) {
    %c0_i32 = arith.constant 0 : i32
    %c0_i32_0 = arith.constant 0 : i32
    %c0_i32_1 = arith.constant 0 : i32
    return %c0_i32, %c0_i32_0 : i32, i32
  }
  func.func @transform_11(%arg0: i32) -> (i32, i32) {
    %c0_i32 = arith.constant 0 : i32
    %c0_i32_0 = arith.constant 0 : i32
    %c0_i32_1 = arith.constant 0 : i32
    return %c0_i32, %c0_i32_0 : i32, i32
  }
  func.func @transform_12(%arg0: i32) -> (i32, i32) {
    %c0_i32 = arith.constant 0 : i32
    %c0_i32_0 = arith.constant 0 : i32
    return %arg0, %c0_i32 : i32, i32
  }
}

</mosaic_0001>

<bundles_post_ra>
// kernel: tpu_custom_call.1
= control target key start
LH: loop header
LB: loop body
LE: loop exit
PB: predicated region body
PF: predicated region fallthrough
CT: control target
= control target key end

     0   :  { %17 = vsyncpa [#allocation3], 0  ;;  %s931_s0 = inlined_call_operand.hbm [shape: f32[8,128], index: 0, kind: input, shape index: {}]   ;;  %s932_s1 = inlined_call_operand.hbm [shape: f32[8,32], index: 1, kind: input, shape index: {}]   ;;  %s933_s2 = inlined_call_operand.hbm [shape: bf16[32,256], index: 2, kind: input, shape index: {}]   ;;  %s934_s3 = inlined_call_operand.vmem [shape: f32[1,256], index: 3, kind: input, shape index: {}]   ;;  %s935_s4 = inlined_call_operand.hbm [shape: bf16[128,128], index: 4, kind: input, shape index: {}]   ;;  %s936_s5 = inlined_call_operand.vmem [shape: f32[1,128], index: 5, kind: input, shape index: {}]   ;;  %s937_s6 = inlined_call_operand.vmem [shape: f32[1,128], index: 6, kind: input, shape index: {}]   ;;  %s938_s7 = inlined_call_operand.vmem [shape: f32[1,128], index: 7, kind: input, shape index: {}]   ;;  %s939_s8 = inlined_call_operand.hbm [shape: bf16[128,128], index: 8, kind: input, shape index: {}]   ;;  %s940_s9 = inlined_call_operand.vmem [shape: f32[1,128], index: 9, kind: input, shape index: {}]   ;;  %s941_s10 = inlined_call_operand.vmem [shape: f32[1,128], index: 10, kind: input, shape index: {}]   ;;  %s942_s11 = inlined_call_operand.vmem [shape: f32[1,128], index: 11, kind: input, shape index: {}]   ;;  %s943_s12 = inlined_call_operand.hbm [shape: f32[8,128], index: 12, kind: output, shape index: {}]  }
   0x1   :  { %18 = vsyncpa [#allocation6], 0 }
   0x2   :  { %19 = vsyncpa [#allocation9], 0  ;;  %s37_s23 = sshll.u32 %s932_s1, 4  ;;  %s38_s23 = int_to_ptr.hbm [resolvable:$true] %s37_s23 }
   0x3   :  { %20 = vsyncpa [#allocation4], 0  ;;  %s806_s24 = smov [#allocation5]   ;;  %s62_s28 = sshll.u32 %s935_s4, 4  ;;  %s63_s28 = int_to_ptr.hbm [resolvable:$true] %s62_s28 }
   0x4   :  { %s39_s25 = sshll.u32 %s806_s24, 4  ;;  %s807_s29 = smov [#allocation8]   ;;  %s40_s25 = int_to_ptr.vmem [resolvable:$true] %s39_s25 }
   0x5   :  { %42 = dma.hbm_to_vmem [thread:$0]  %s38_s23, 128, %s40_s25, [#allocation6]  }
   0x6   :  { %s64_s30 = sshll.u32 %s807_s29, 4  ;;  %s808_s13 = smov 64   ;;  %s65_s30 = int_to_ptr.vmem [resolvable:$true] %s64_s30 }
   0x7   :  { %s809_s14 = smov 4   ;;  %s26_s1 = sshll.u32 %s931_s0, 4  ;;  %s27_s1 = int_to_ptr.hbm [resolvable:$true] %s26_s1 }
   0x8   :  { %70 = dma.hbm_to_vmem [thread:$0]  %s63_s28, 1024, %s65_s30, [#allocation9], %s808_s13, %s808_s13, %s809_s14  }
   0x9   :  { %s810_s17 = smov [#allocation2]   ;;  %s47_s4 = sshll.u32 %s933_s2, 4  ;;  %s48_s4 = int_to_ptr.hbm [resolvable:$true] %s47_s4 }
   0xa   :  { %s28_s18 = sshll.u32 %s810_s17, 4  ;;  %s811_s21 = smov [#allocation7]   ;;  %s29_s18 = int_to_ptr.vmem [resolvable:$true] %s28_s18 }
   0xb   :  { %31 = dma.hbm_to_vmem [thread:$0]  %s27_s1, 128, %s29_s18, [#allocation3]  }
   0xc   :  { %s49_s22 = sshll.u32 %s811_s21, 4  ;;  %s812_s23 = smov 128   ;;  %s50_s22 = int_to_ptr.vmem [resolvable:$true] %s49_s22 }
   0xd   :  { %s813_s24 = smov 8   ;;  %s81_s0 = sshll.u32 %s939_s8, 4  ;;  %s82_s0 = int_to_ptr.hbm [resolvable:$true] %s81_s0 }
   0xe   :  { %55 = dma.hbm_to_vmem [thread:$0]  %s48_s4, 512, %s50_s22, [#allocation6], %s812_s23, %s812_s23, %s813_s24  }
   0xf   :  { %s814_s27 = smov [#allocation10]  }
  0x10   :  { %s83_s28 = sshll.u32 %s814_s27, 4  ;;  %s84_s28 = int_to_ptr.vmem [resolvable:$true] %s83_s28 }
  0x11   :  { %89 = dma.hbm_to_vmem [thread:$0]  %s82_s0, 1024, %s84_s28, [#allocation9], %s808_s13, %s808_s13, %s809_s14  }
  0x12   :  { %798 = dma.done.wait [#allocation3], 128  }
  0x13   :  { %799 = vsyncadd [#allocation3], 4294967168 }
  0x14   :  { %800 = dma.done.wait [#allocation6], 640  }
  0x15   :  { %801 = vsyncadd [#allocation6], 4294966656 }
  0x16   :  { %802 = dma.done.wait [#allocation9], 2048  }
  0x17   :  { %803 = vsyncadd [#allocation9], 4294965248  ;;  %v533_v0 = vld [vmem:[#allocation7 + $0x10] sm:$0xf]  ;;  %v610_v1 = vld [vmem:[#allocation7 + $0x14] sm:$0xf0] }
  0x18   :  { %v609_v2 = vld [vmem:[#allocation7 + $0x14] sm:$0xf]  ;;  %v534_v3 = vor.u32 %v610_v1, %v533_v0  ;;  %v535_v4 = vld [vmem:[#allocation7 + $0x18] sm:$0xf0]  ;;  %v525_v5 = vld [vmem:[#allocation7] sm:$0xf] }
  0x19   :  { %v608_v6 = vld [vmem:[#allocation7 + $0x4] sm:$0xf0]  ;;  %v538_v7 = vor.u32 %v609_v2, %v535_v4  ;;  %v607_v8 = vld [vmem:[#allocation7 + $0x4] sm:$0xf]  ;;  %v527_v9 = vld [vmem:[#allocation7 + $0x8] sm:$0xf0] }
  0x1a   :  { %159 = vmatpush.bf16.msra.mxu0 %v534_v3  ;;  %v526_v10 = vor.u32 %v608_v6, %v525_v5  ;;  %v117_v11 = vld [vmem:[#allocation5] sm:$0xff]  ;;  %v530_v13 = vor.u32 %v607_v8, %v527_v9  ;;  %v617_v14 = vld [vmem:[#allocation8 + $0x30] sm:$0xff]  ;;  %vm149_vm0 = vcmask 261120   ;;  %v616_v16 = vld [vmem:[#allocation8 + $0x28] sm:$0xff]  ;;  %s816_s17 = smov [#allocation11]   ;;  %s511_s4 = sshll.u32 %s943_s12, 4  ;;  %s512_s4 = int_to_ptr.hbm [resolvable:$true] %s511_s4 }
  0x1b   :  { %v618_v12 = vld [vmem:[#allocation8 + $0x38] sm:$0xff]  ;;  %172 = vmatpush.bf16.msra.mxu1 %v538_v7  ;;  %v118_v15 = vpack.c.bf16 %v117_v11, %v117_v11  ;;  %v615_v17 = vld [vmem:[#allocation8 + $0x20] sm:$0xff]  ;;  %v613_v19 = vld [vmem:[#allocation8 + $0x10] sm:$0xff]  ;;  %s509_s18 = sshll.u32 %s816_s17, 4  ;;  %s510_s18 = int_to_ptr.vmem [resolvable:$true] %s509_s18 }
  0x1c   :  { %252 = vmatpush.bf16.msra.mxu2 %v618_v12  ;;  %v614_v18 = vld [vmem:[#allocation8 + $0x18] sm:$0xff]  ;;  %v612_v20 = vld [vmem:[#allocation8 + $0x8] sm:$0xff]  ;;  %v611_v21 = vld [vmem:[#allocation8] sm:$0xff] }
  0x1d   :  { %v123_v22 = vld [vmem:[%s934_s3] sm:$0x3] }
  0x1e   :  { %160 = vmatpush.bf16.msra.mxu0 %v526_v10  ;;  %v125_v23 = vperm.slane %v123_v22, 0  ;;  %v126_v24 = vperm.slane %v123_v22, 1  ;;  %v900_v28 = vld [vmem:[#allocation2] sm:$0xff] }
  0x1f   :  { %173 = vmatpush.bf16.msra.mxu1 %v530_v13  ;;  %v638_v36 = vld [vmem:[%s936_s5] ss:$0 sm:$0xff] }
  0x20   :  { %253 = vmatpush.bf16.msra.mxu2 %v617_v14 }
  0x21   :  { %539 = vmatmul.msk.bf16.vlgmr.msra.gmra.mxu0 %vm149_vm0, %v118_v15 }
  0x22   :  { %540 = vmatmul.msk.bf16.vlgmr.msra.gmra.mxu1 %vm149_vm0, %v118_v15  ;;  %v815_v15 = vmov 128.0  }
  0x24   :  { %254 = vmatpush.bf16.msra.mxu2 %v616_v16  ;;  %v626_v16 = vld [vmem:[#allocation10 + $0x38] sm:$0xff] }
  0x25   :  { %415 = vmatpush.bf16.msra.mxu3 %v626_v16 }
  0x28   :  { %255 = vmatpush.bf16.msra.mxu2 %v615_v17 }
  0x2c   :  { %256 = vmatpush.bf16.msra.mxu2 %v614_v18 }
  0x30   :  { %257 = vmatpush.bf16.msra.mxu2 %v613_v19 }
  0x34   :  { %258 = vmatpush.bf16.msra.mxu2 %v612_v20 }
  0x38   :  { %259 = vmatpush.bf16.msra.mxu2 %v611_v21 }
  0x9e   :  { %v162_v25 = vpop.f32.mrf.mxu0 }
  0x9f   :  { %v163_v26 = vadd.f32 %v162_v25, %v125_v23  ;;  %v175_v27 = vpop.f32.mrf.mxu1 }
  0xa0   :  { %v176_v30 = vadd.f32 %v175_v27, %v126_v24  ;;  %v625_v27 = vld [vmem:[#allocation10 + $0x30] sm:$0xff] }
  0xa1   :  { %v180_v29 = vadd.f32 1.0, %v163_v26  ;;  %416 = vmatpush.bf16.msra.mxu3 %v625_v27 }
  0xa3   :  { %v181_v31 = vmul.f32 %v180_v29, %v900_v28  ;;  %v624_v29 = vld [vmem:[#allocation10 + $0x28] sm:$0xff] }
  0xa5   :  { %v182_v32 = vadd.f32 %v181_v31, %v176_v30  ;;  %417 = vmatpush.bf16.msra.mxu3 %v624_v29  ;;  %v623_v30 = vld [vmem:[#allocation10 + $0x20] sm:$0xff]  ;;  %v622_v31 = vld [vmem:[#allocation10 + $0x18] sm:$0xff] }
  0xa6   :  { %v164_v33 = vpop.f32.mrf.mxu0 }
  0xa7   :  { %v177_v34 = vpop.f32.mrf.mxu1  ;;  %v183_v35 = vpack.c.bf16 %v182_v32, %v182_v32  ;;  %v621_v32 = vld [vmem:[#allocation10 + $0x10] sm:$0xff]  ;;  %v620_v33 = vld [vmem:[#allocation10 + $0x8] sm:$0xff] }
  0xa8   :  { %v619_v34 = vld [vmem:[#allocation10] sm:$0xff] }
  0xa9   :  { %260 = vmatmul.bf16.vlgmr.msra.gmra.mxu2 %v183_v35  ;;  %418 = vmatpush.bf16.msra.mxu3 %v623_v30 }
  0xad   :  { %419 = vmatpush.bf16.msra.mxu3 %v622_v31 }
  0xb1   :  { %420 = vmatpush.bf16.msra.mxu3 %v621_v32 }
  0xb5   :  { %421 = vmatpush.bf16.msra.mxu3 %v620_v33 }
  0xb9   :  { %422 = vmatpush.bf16.msra.mxu3 %v619_v34 }
 0x12c   :  { %v261_v37 = vpop.f32.mrf.mxu2 }
 0x12d   :  { %v262_v38 = vadd.f32 %v638_v36, %v261_v37 }
 0x12f   :  { %v266_v39 = vmul.f32 0.70710677, %v262_v38  ;;  %v265_v12 = vmul.f32 0.5, %v262_v38 }
 0x131   :  { %v267_v40 = vmul.f32 %v266_v39, %v266_v39 }
 0x133   :  { %v268_v41 = vmin.f32 %v267_v40, 16.0 }
 0x134   :  { %v263_v42 = vpop.f32.mrf.mxu2 }
 0x135   :  { %v269_v43 = vmul.f32 2.1237322e-06, %v268_v41  ;;  %v280_v44 = vmul.f32 3.8918573e-05, %v268_v41 }
 0x137   :  { %v270_v45 = vadd.f32 0.00028619796, %v269_v43  ;;  %v281_v46 = vadd.f32 0.001143296, %v280_v44  ;;  %v639_v44 = vld [vmem:[%s937_s6] ss:$0 sm:$0xff] }
 0x139   :  { %v271_v47 = vmul.f32 %v270_v45, %v268_v41  ;;  %v282_v48 = vmul.f32 %v281_v46, %v268_v41 }
 0x13b   :  { %v283_v49 = vadd.f32 0.014752088, %v282_v48  ;;  %v272_v50 = vadd.f32 0.0036580483, %v271_v47  ;;  %v640_v47 = vld [vmem:[%s938_s7] ss:$0 sm:$0xff] }
 0x13d   :  { %v284_v51 = vmul.f32 %v283_v49, %v268_v41  ;;  %v273_v53 = vmul.f32 %v272_v50, %v268_v41 }
 0x13f   :  { %v285_v52 = vadd.f32 0.112945676, %v284_v51  ;;  %v274_v56 = vadd.f32 0.05243302, %v273_v53  ;;  %v641_v51 = vld [vmem:[%s940_s9] ss:$0 sm:$0xff] }
 0x141   :  { %v286_v54 = vmul.f32 %v285_v52, %v268_v41  ;;  %v275_v59 = vmul.f32 %v274_v56, %v268_v41 }
 0x143   :  { %v287_v55 = vadd.f32 0.4994258, %v286_v54  ;;  %v276_v60 = vadd.f32 0.18741608, %v275_v59 }
 0x145   :  { %v288_v57 = vmul.f32 %v287_v55, %v268_v41  ;;  %v277_v62 = vmul.f32 %v276_v60, %v268_v41 }
 0x147   :  { %v289_v58 = vadd.f32 1.0, %v288_v57  ;;  %v278_v2 = vadd.f32 1.1283791, %v277_v62 }
 0x149   :  { %644 = vrcp.f32 %v289_v58  ;;  %v301_v1 = vand.u32 2147483648, %v289_v58  ;;  %v299_v4 = vand.u32 2147483647, %v289_v58  ;;  %vm295_vm2 = vweird.f32 %v289_v58 }
 0x14a   :  { %v279_v7 = vmul.f32 %v278_v2, %v266_v39  ;;  %646 = vrcp.f32 %v815_v15 }
 0x14b   :  { %v302_v6 = vor.u32 1.1754944e-38, %v301_v1  ;;  %vm300_vm4 = vcmp.eq.f32.partialorder %v299_v4, 8.507059e+37 }
 0x14f   :  { %v645_v61 = vpop.eup %644 }
 0x150   :  { %v291_v63 = vmul.f32 %v645_v61, %v289_v58  ;;  %vm296_vm1 = vweird.f32 %v645_v61  ;;  %v647_v17 = vpop.eup %646 }
 0x151   :  { %vm297_vm3 = vmor %vm295_vm2, %vm296_vm1  ;;  %v312_v18 = vmul.f32 128.0, %v647_v17  ;;  %vm316_vm5 = vweird.f32 %v647_v17 }
 0x152   :  { %v292_v0 = vsub.f32 1.0, %v291_v63 }
 0x153   :  { %v313_v19 = vsub.f32 1.0, %v312_v18 }
 0x154   :  { %v293_v3 = vmul.f32 %v645_v61, %v292_v0 }
 0x155   :  { %v314_v20 = vmul.f32 %v647_v17, %v313_v19 }
 0x156   :  { %v294_v5 = vadd.f32 %v645_v61, %v293_v3 }
 0x157   :  { %v315_v21 = vadd.f32 %v647_v17, %v314_v20 }
 0x158   :  { %v298_v8 = vsel %vm297_vm3, %v645_v61, %v294_v5 }
 0x159   :  { %v303_v9 = vsel %vm300_vm4, %v302_v6, %v298_v8  ;;  %v906_v22 = vsel %vm316_vm5, %v647_v17, %v315_v21 }
 0x15a   :  { %v304_v10 = vmul.f32 %v303_v9, %v279_v7 }
 0x15c   :  { %v573_v11 = vclamps-f32 %v304_v10, 1.0 }
 0x15e   :  { %v307_v13 = vadd.f32 1.0, %v573_v11 }
 0x160   :  { %v308_v14 = vmul.f32 %v307_v13, %v265_v12 }
 0x162   :  { %309 = vadd.xlane.f32.xlu0 %v308_v14 }
 0x1d5   :  { %v310_v23 = vpop.xlane.xlu0 %309 }
 0x1d6   :  { %v318_v24 = vmul.f32 %v906_v22, %v310_v23 }
 0x1d8   :  { %v319_v25 = vsub.f32 %v308_v14, %v318_v24 }
 0x1da   :  { %v320_v26 = vmul.f32 %v319_v25, %v319_v25 }
 0x1dc   :  { %321 = vadd.xlane.f32.xlu0 %v320_v26 }
 0x24f   :  { %v322_v35 = vpop.xlane.xlu0 %321 }
 0x250   :  { %v323_v36 = vmul.f32 %v322_v35, %v906_v22 }
 0x252   :  { %v324_v37 = vadd.f32 1e-05, %v323_v36 }
 0x254   :  { %648 = vrsqrt.f32 %v324_v37  ;;  %vm331_vm7 = vweird.f32 %v324_v37 }
 0x25a   :  { %v649_v38 = vpop.eup %648 }
 0x25b   :  { %v326_v39 = vmul.f32 %v649_v38, %v324_v37  ;;  %vm332_vm6 = vweird.f32 %v649_v38 }
 0x25c   :  { %vm333_vm8 = vmor %vm331_vm7, %vm332_vm6 }
 0x25d   :  { %v327_v40 = vmul.f32 %v649_v38, %v326_v39 }
 0x25f   :  { %v328_v41 = vmul.f32 0.5, %v327_v40 }
 0x261   :  { %v329_v42 = vsub.f32 1.5, %v328_v41 }
 0x263   :  { %v330_v43 = vmul.f32 %v649_v38, %v329_v42 }
 0x265   :  { %v334_v45 = vsel %vm333_vm8, %v649_v38, %v330_v43 }
 0x266   :  { %v335_v46 = vmul.f32 %v334_v45, %v319_v25  ;;  %v642_v45 = vld [vmem:[%s941_s10] ss:$0 sm:$0xff] }
 0x268   :  { %v340_v48 = vmul.f32 %v639_v44, %v335_v46 }
 0x26a   :  { %v345_v49 = vadd.f32 %v640_v47, %v340_v48 }
 0x26c   :  { %v346_v50 = vpack.c.bf16 %v345_v49, %v345_v49 }
 0x26e   :  { %423 = vmatmul.bf16.vlgmr.msra.gmra.mxu3 %v346_v50 }
 0x2f1   :  { %v424_v52 = vpop.f32.mrf.mxu3 }
 0x2f2   :  { %v425_v53 = vadd.f32 %v641_v51, %v424_v52 }
 0x2f4   :  { %v429_v54 = vmul.f32 0.70710677, %v425_v53  ;;  %v428_v29 = vmul.f32 0.5, %v425_v53 }
 0x2f6   :  { %v430_v55 = vmul.f32 %v429_v54, %v429_v54 }
 0x2f8   :  { %v431_v56 = vmin.f32 %v430_v55, 16.0 }
 0x2f9   :  { %v426_v57 = vpop.f32.mrf.mxu3 }
 0x2fa   :  { %v432_v58 = vmul.f32 2.1237322e-06, %v431_v56  ;;  %v443_v59 = vmul.f32 3.8918573e-05, %v431_v56 }
 0x2fc   :  { %v433_v60 = vadd.f32 0.00028619796, %v432_v58  ;;  %v444_v61 = vadd.f32 0.001143296, %v443_v59 }
 0x2fe   :  { %v434_v62 = vmul.f32 %v433_v60, %v431_v56  ;;  %v445_v63 = vmul.f32 %v444_v61, %v431_v56 }
 0x300   :  { %v446_v0 = vadd.f32 0.014752088, %v445_v63  ;;  %v435_v1 = vadd.f32 0.0036580483, %v434_v62 }
 0x302   :  { %v447_v2 = vmul.f32 %v446_v0, %v431_v56  ;;  %v436_v4 = vmul.f32 %v435_v1, %v431_v56 }
 0x304   :  { %v448_v3 = vadd.f32 0.112945676, %v447_v2  ;;  %v437_v7 = vadd.f32 0.05243302, %v436_v4 }
 0x306   :  { %v449_v5 = vmul.f32 %v448_v3, %v431_v56  ;;  %v438_v10 = vmul.f32 %v437_v7, %v431_v56 }
 0x308   :  { %v450_v6 = vadd.f32 0.4994258, %v449_v5  ;;  %v439_v11 = vadd.f32 0.18741608, %v438_v10 }
 0x30a   :  { %v451_v8 = vmul.f32 %v450_v6, %v431_v56  ;;  %v440_v13 = vmul.f32 %v439_v11, %v431_v56 }
 0x30c   :  { %v452_v9 = vadd.f32 1.0, %v451_v8  ;;  %v441_v17 = vadd.f32 1.1283791, %v440_v13 }
 0x30e   :  { %650 = vrcp.f32 %v452_v9  ;;  %v464_v16 = vand.u32 2147483648, %v452_v9  ;;  %v462_v19 = vand.u32 2147483647, %v452_v9  ;;  %vm458_vm10 = vweird.f32 %v452_v9 }
 0x30f   :  { %v442_v23 = vmul.f32 %v441_v17, %v429_v54 }
 0x310   :  { %v465_v21 = vor.u32 1.1754944e-38, %v464_v16  ;;  %vm463_vm12 = vcmp.eq.f32.partialorder %v462_v19, 8.507059e+37 }
 0x314   :  { %v651_v12 = vpop.eup %650 }
 0x315   :  { %v454_v14 = vmul.f32 %v651_v12, %v452_v9  ;;  %vm459_vm9 = vweird.f32 %v651_v12 }
 0x316   :  { %vm460_vm11 = vmor %vm458_vm10, %vm459_vm9 }
 0x317   :  { %v455_v15 = vsub.f32 1.0, %v454_v14 }
 0x319   :  { %v456_v18 = vmul.f32 %v651_v12, %v455_v15 }
 0x31b   :  { %v457_v20 = vadd.f32 %v651_v12, %v456_v18 }
 0x31d   :  { %v461_v24 = vsel %vm460_vm11, %v651_v12, %v457_v20 }
 0x31e   :  { %v466_v25 = vsel %vm463_vm12, %v465_v21, %v461_v24 }
 0x31f   :  { %v467_v26 = vmul.f32 %v466_v25, %v442_v23 }
 0x321   :  { %v606_v27 = vclamps-f32 %v467_v26, 1.0 }
 0x323   :  { %v470_v30 = vadd.f32 1.0, %v606_v27 }
 0x325   :  { %v471_v31 = vmul.f32 %v470_v30, %v428_v29 }
 0x327   :  { %472 = vadd.xlane.f32.xlu1 %v471_v31 }
 0x39a   :  { %v473_v32 = vpop.xlane.xlu1 %472 }
 0x39b   :  { %v474_v33 = vmul.f32 %v473_v32, %v906_v22 }
 0x39d   :  { %v475_v34 = vsub.f32 %v471_v31, %v474_v33 }
 0x39f   :  { %v476_v35 = vmul.f32 %v475_v34, %v475_v34 }
 0x3a1   :  { %477 = vadd.xlane.f32.xlu1 %v476_v35 }
 0x414   :  { %v478_v36 = vpop.xlane.xlu1 %477 }
 0x415   :  { %v479_v37 = vmul.f32 %v478_v36, %v906_v22  ;;  %v643_v22 = vld [vmem:[%s942_s11] ss:$0 sm:$0xff] }
 0x417   :  { %v480_v38 = vadd.f32 1e-05, %v479_v37 }
 0x419   :  { %652 = vrsqrt.f32 %v480_v38  ;;  %vm487_vm14 = vweird.f32 %v480_v38 }
 0x41f   :  { %v653_v39 = vpop.eup %652 }
 0x420   :  { %v482_v40 = vmul.f32 %v653_v39, %v480_v38  ;;  %vm488_vm13 = vweird.f32 %v653_v39 }
 0x421   :  { %vm489_vm15 = vmor %vm487_vm14, %vm488_vm13 }
 0x422   :  { %v483_v41 = vmul.f32 %v653_v39, %v482_v40 }
 0x424   :  { %v484_v42 = vmul.f32 0.5, %v483_v41 }
 0x426   :  { %v485_v43 = vsub.f32 1.5, %v484_v42 }
 0x428   :  { %v486_v44 = vmul.f32 %v653_v39, %v485_v43 }
 0x42a   :  { %v490_v46 = vsel %vm489_vm15, %v653_v39, %v486_v44 }
 0x42b   :  { %v491_v47 = vmul.f32 %v490_v46, %v475_v34 }
 0x42d   :  { %v496_v48 = vmul.f32 %v642_v45, %v491_v47 }
 0x42f   :  { %v501_v49 = vadd.f32 %v643_v22, %v496_v48 }
 0x431   :  { %v502_v50 = vadd.f32 %v501_v49, %v900_v28 }
 0x433   :  { %503 = vst [vmem:[#allocation11] sm:$0xff] %v502_v50 }
 0x434   :  { %514 = dma.vmem_to_hbm [thread:$0]  %s510_s18, 128, %s512_s4, [#allocation4]  }
 0x435   :  { %804 = dma.done.wait [#allocation4], 128  }
 0x436   :  { %805 = vsyncadd [#allocation4], 4294967168 }
 0x437   :  { %519 = vsyncpa [#allocation3], 1 }
 0x438   :  { %520 = vsyncpa [#allocation6], 1 }
 0x439   :  { %521 = vsyncpa [#allocation9], 1 }
 0x43a   :  { %522 = vsyncpa [#allocation4], 1 }

// kernel: tpu_custom_call.1
= control target key start
LH: loop header
LB: loop body
LE: loop exit
PB: predicated region body
PF: predicated region fallthrough
CT: control target
= control target key end

     0   :  { %17 = vsyncpa [#allocation3], 0  ;;  %s931_s0 = inlined_call_operand.hbm [shape: f32[8,128], index: 0, kind: input, shape index: {}]   ;;  %s932_s1 = inlined_call_operand.hbm [shape: f32[8,32], index: 1, kind: input, shape index: {}]   ;;  %s933_s2 = inlined_call_operand.hbm [shape: bf16[32,256], index: 2, kind: input, shape index: {}]   ;;  %s934_s3 = inlined_call_operand.vmem [shape: f32[1,256], index: 3, kind: input, shape index: {}]   ;;  %s935_s4 = inlined_call_operand.hbm [shape: bf16[128,128], index: 4, kind: input, shape index: {}]   ;;  %s936_s5 = inlined_call_operand.vmem [shape: f32[1,128], index: 5, kind: input, shape index: {}]   ;;  %s937_s6 = inlined_call_operand.vmem [shape: f32[1,128], index: 6, kind: input, shape index: {}]   ;;  %s938_s7 = inlined_call_operand.vmem [shape: f32[1,128], index: 7, kind: input, shape index: {}]   ;;  %s939_s8 = inlined_call_operand.hbm [shape: bf16[128,128], index: 8, kind: input, shape index: {}]   ;;  %s940_s9 = inlined_call_operand.vmem [shape: f32[1,128], index: 9, kind: input, shape index: {}]   ;;  %s941_s10 = inlined_call_operand.vmem [shape: f32[1,128], index: 10, kind: input, shape index: {}]   ;;  %s942_s11 = inlined_call_operand.vmem [shape: f32[1,128], index: 11, kind: input, shape index: {}]   ;;  %s943_s12 = inlined_call_operand.hbm [shape: f32[8,128], index: 12, kind: output, shape index: {}]  }
   0x1   :  { %18 = vsyncpa [#allocation6], 0 }
   0x2   :  { %19 = vsyncpa [#allocation9], 0  ;;  %s37_s23 = sshll.u32 %s932_s1, 4  ;;  %s38_s23 = int_to_ptr.hbm [resolvable:$true] %s37_s23 }
   0x3   :  { %20 = vsyncpa [#allocation4], 0  ;;  %s806_s24 = smov [#allocation5]   ;;  %s62_s28 = sshll.u32 %s935_s4, 4  ;;  %s63_s28 = int_to_ptr.hbm [resolvable:$true] %s62_s28 }
   0x4   :  { %s39_s25 = sshll.u32 %s806_s24, 4  ;;  %s807_s29 = smov [#allocation8]   ;;  %s40_s25 = int_to_ptr.vmem [resolvable:$true] %s39_s25 }
   0x5   :  { %42 = dma.hbm_to_vmem [thread:$0]  %s38_s23, 128, %s40_s25, [#allocation6]  }
   0x6   :  { %s64_s30 = sshll.u32 %s807_s29, 4  ;;  %s808_s13 = smov 64   ;;  %s65_s30 = int_to_ptr.vmem [resolvable:$true] %s64_s30 }
   0x7   :  { %s809_s14 = smov 4   ;;  %s26_s1 = sshll.u32 %s931_s0, 4  ;;  %s27_s1 = int_to_ptr.hbm [resolvable:$true] %s26_s1 }
   0x8   :  { %70 = dma.hbm_to_vmem [thread:$0]  %s63_s28, 1024, %s65_s30, [#allocation9], %s808_s13, %s808_s13, %s809_s14  }
   0x9   :  { %s810_s17 = smov [#allocation2]   ;;  %s47_s4 = sshll.u32 %s933_s2, 4  ;;  %s48_s4 = int_to_ptr.hbm [resolvable:$true] %s47_s4 }
   0xa   :  { %s28_s18 = sshll.u32 %s810_s17, 4  ;;  %s811_s21 = smov [#allocation7]   ;;  %s29_s18 = int_to_ptr.vmem [resolvable:$true] %s28_s18 }
   0xb   :  { %31 = dma.hbm_to_vmem [thread:$0]  %s27_s1, 128, %s29_s18, [#allocation3]  }
   0xc   :  { %s49_s22 = sshll.u32 %s811_s21, 4  ;;  %s812_s23 = smov 128   ;;  %s50_s22 = int_to_ptr.vmem [resolvable:$true] %s49_s22 }
   0xd   :  { %s813_s24 = smov 8   ;;  %s81_s0 = sshll.u32 %s939_s8, 4  ;;  %s82_s0 = int_to_ptr.hbm [resolvable:$true] %s81_s0 }
   0xe   :  { %55 = dma.hbm_to_vmem [thread:$0]  %s48_s4, 512, %s50_s22, [#allocation6], %s812_s23, %s812_s23, %s813_s24  }
   0xf   :  { %s814_s27 = smov [#allocation10]  }
  0x10   :  { %s83_s28 = sshll.u32 %s814_s27, 4  ;;  %s84_s28 = int_to_ptr.vmem [resolvable:$true] %s83_s28 }
  0x11   :  { %89 = dma.hbm_to_vmem [thread:$0]  %s82_s0, 1024, %s84_s28, [#allocation9], %s808_s13, %s808_s13, %s809_s14  }
  0x12   :  { %798 = dma.done.wait [#allocation3], 128  }
  0x13   :  { %799 = vsyncadd [#allocation3], 4294967168 }
  0x14   :  { %800 = dma.done.wait [#allocation6], 640  }
  0x15   :  { %801 = vsyncadd [#allocation6], 4294966656 }
  0x16   :  { %802 = dma.done.wait [#allocation9], 2048  }
  0x17   :  { %803 = vsyncadd [#allocation9], 4294965248  ;;  %v533_v0 = vld [vmem:[#allocation7 + $0x10] sm:$0xf]  ;;  %v610_v1 = vld [vmem:[#allocation7 + $0x14] sm:$0xf0] }
  0x18   :  { %v609_v2 = vld [vmem:[#allocation7 + $0x14] sm:$0xf]  ;;  %v534_v3 = vor.u32 %v610_v1, %v533_v0  ;;  %v535_v4 = vld [vmem:[#allocation7 + $0x18] sm:$0xf0]  ;;  %v525_v5 = vld [vmem:[#allocation7] sm:$0xf] }
  0x19   :  { %v608_v6 = vld [vmem:[#allocation7 + $0x4] sm:$0xf0]  ;;  %v538_v7 = vor.u32 %v609_v2, %v535_v4  ;;  %v607_v8 = vld [vmem:[#allocation7 + $0x4] sm:$0xf]  ;;  %v527_v9 = vld [vmem:[#allocation7 + $0x8] sm:$0xf0] }
  0x1a   :  { %159 = vmatpush.bf16.msra.mxu0 %v534_v3  ;;  %v526_v10 = vor.u32 %v608_v6, %v525_v5  ;;  %v117_v11 = vld [vmem:[#allocation5] sm:$0xff]  ;;  %v530_v13 = vor.u32 %v607_v8, %v527_v9  ;;  %v617_v14 = vld [vmem:[#allocation8 + $0x30] sm:$0xff]  ;;  %vm149_vm0 = vcmask 261120   ;;  %v616_v16 = vld [vmem:[#allocation8 + $0x28] sm:$0xff]  ;;  %s816_s17 = smov [#allocation11]   ;;  %s511_s4 = sshll.u32 %s943_s12, 4  ;;  %s512_s4 = int_to_ptr.hbm [resolvable:$true] %s511_s4 }
  0x1b   :  { %v618_v12 = vld [vmem:[#allocation8 + $0x38] sm:$0xff]  ;;  %172 = vmatpush.bf16.msra.mxu1 %v538_v7  ;;  %v118_v15 = vpack.c.bf16 %v117_v11, %v117_v11  ;;  %v615_v17 = vld [vmem:[#allocation8 + $0x20] sm:$0xff]  ;;  %v613_v19 = vld [vmem:[#allocation8 + $0x10] sm:$0xff]  ;;  %s509_s18 = sshll.u32 %s816_s17, 4  ;;  %s510_s18 = int_to_ptr.vmem [resolvable:$true] %s509_s18 }
  0x1c   :  { %252 = vmatpush.bf16.msra.mxu2 %v618_v12  ;;  %v614_v18 = vld [vmem:[#allocation8 + $0x18] sm:$0xff]  ;;  %v612_v20 = vld [vmem:[#allocation8 + $0x8] sm:$0xff]  ;;  %v611_v21 = vld [vmem:[#allocation8] sm:$0xff] }
  0x1d   :  { %v123_v22 = vld [vmem:[%s934_s3] sm:$0x3] }
  0x1e   :  { %160 = vmatpush.bf16.msra.mxu0 %v526_v10  ;;  %v125_v23 = vperm.slane %v123_v22, 0  ;;  %v126_v24 = vperm.slane %v123_v22, 1  ;;  %v900_v28 = vld [vmem:[#allocation2] sm:$0xff] }
  0x1f   :  { %173 = vmatpush.bf16.msra.mxu1 %v530_v13  ;;  %v638_v36 = vld [vmem:[%s936_s5] ss:$0 sm:$0xff] }
  0x20   :  { %253 = vmatpush.bf16.msra.mxu2 %v617_v14 }
  0x21   :  { %539 = vmatmul.msk.bf16.vlgmr.msra.gmra.mxu0 %vm149_vm0, %v118_v15 }
  0x22   :  { %540 = vmatmul.msk.bf16.vlgmr.msra.gmra.mxu1 %vm149_vm0, %v118_v15  ;;  %v815_v15 = vmov 128.0  }
  0x24   :  { %254 = vmatpush.bf16.msra.mxu2 %v616_v16  ;;  %v626_v16 = vld [vmem:[#allocation10 + $0x38] sm:$0xff] }
  0x25   :  { %415 = vmatpush.bf16.msra.mxu3 %v626_v16 }
  0x28   :  { %255 = vmatpush.bf16.msra.mxu2 %v615_v17 }
  0x2c   :  { %256 = vmatpush.bf16.msra.mxu2 %v614_v18 }
  0x30   :  { %257 = vmatpush.bf16.msra.mxu2 %v613_v19 }
  0x34   :  { %258 = vmatpush.bf16.msra.mxu2 %v612_v20 }
  0x38   :  { %259 = vmatpush.bf16.msra.mxu2 %v611_v21 }
  0x9e   :  { %v162_v25 = vpop.f32.mrf.mxu0 }
  0x9f   :  { %v163_v26 = vadd.f32 %v162_v25, %v125_v23  ;;  %v175_v27 = vpop.f32.mrf.mxu1 }
  0xa0   :  { %v176_v30 = vadd.f32 %v175_v27, %v126_v24  ;;  %v625_v27 = vld [vmem:[#allocation10 + $0x30] sm:$0xff] }
  0xa1   :  { %v180_v29 = vadd.f32 1.0, %v163_v26  ;;  %416 = vmatpush.bf16.msra.mxu3 %v625_v27 }
  0xa3   :  { %v181_v31 = vmul.f32 %v180_v29, %v900_v28  ;;  %v624_v29 = vld [vmem:[#allocation10 + $0x28] sm:$0xff] }
  0xa5   :  { %v182_v32 = vadd.f32 %v181_v31, %v176_v30  ;;  %417 = vmatpush.bf16.msra.mxu3 %v624_v29  ;;  %v623_v30 = vld [vmem:[#allocation10 + $0x20] sm:$0xff]  ;;  %v622_v31 = vld [vmem:[#allocation10 + $0x18] sm:$0xff] }
  0xa6   :  { %v164_v33 = vpop.f32.mrf.mxu0 }
  0xa7   :  { %v177_v34 = vpop.f32.mrf.mxu1  ;;  %v183_v35 = vpack.c.bf16 %v182_v32, %v182_v32  ;;  %v621_v32 = vld [vmem:[#allocation10 + $0x10] sm:$0xff]  ;;  %v620_v33 = vld [vmem:[#allocation10 + $0x8] sm:$0xff] }
  0xa8   :  { %v619_v34 = vld [vmem:[#allocation10] sm:$0xff] }
  0xa9   :  { %260 = vmatmul.bf16.vlgmr.msra.gmra.mxu2 %v183_v35  ;;  %418 = vmatpush.bf16.msra.mxu3 %v623_v30 }
  0xad   :  { %419 = vmatpush.bf16.msra.mxu3 %v622_v31 }
  0xb1   :  { %420 = vmatpush.bf16.msra.mxu3 %v621_v32 }
  0xb5   :  { %421 = vmatpush.bf16.msra.mxu3 %v620_v33 }
  0xb9   :  { %422 = vmatpush.bf16.msra.mxu3 %v619_v34 }
 0x12c   :  { %v261_v37 = vpop.f32.mrf.mxu2 }
 0x12d   :  { %v262_v38 = vadd.f32 %v638_v36, %v261_v37 }
 0x12f   :  { %v266_v39 = vmul.f32 0.70710677, %v262_v38  ;;  %v265_v12 = vmul.f32 0.5, %v262_v38 }
 0x131   :  { %v267_v40 = vmul.f32 %v266_v39, %v266_v39 }
 0x133   :  { %v268_v41 = vmin.f32 %v267_v40, 16.0 }
 0x134   :  { %v263_v42 = vpop.f32.mrf.mxu2 }
 0x135   :  { %v269_v43 = vmul.f32 2.1237322e-06, %v268_v41  ;;  %v280_v44 = vmul.f32 3.8918573e-05, %v268_v41 }
 0x137   :  { %v270_v45 = vadd.f32 0.00028619796, %v269_v43  ;;  %v281_v46 = vadd.f32 0.001143296, %v280_v44  ;;  %v639_v44 = vld [vmem:[%s937_s6] ss:$0 sm:$0xff] }
 0x139   :  { %v271_v47 = vmul.f32 %v270_v45, %v268_v41  ;;  %v282_v48 = vmul.f32 %v281_v46, %v268_v41 }
 0x13b   :  { %v283_v49 = vadd.f32 0.014752088, %v282_v48  ;;  %v272_v50 = vadd.f32 0.0036580483, %v271_v47  ;;  %v640_v47 = vld [vmem:[%s938_s7] ss:$0 sm:$0xff] }
 0x13d   :  { %v284_v51 = vmul.f32 %v283_v49, %v268_v41  ;;  %v273_v53 = vmul.f32 %v272_v50, %v268_v41 }
 0x13f   :  { %v285_v52 = vadd.f32 0.112945676, %v284_v51  ;;  %v274_v56 = vadd.f32 0.05243302, %v273_v53  ;;  %v641_v51 = vld [vmem:[%s940_s9] ss:$0 sm:$0xff] }
 0x141   :  { %v286_v54 = vmul.f32 %v285_v52, %v268_v41  ;;  %v275_v59 = vmul.f32 %v274_v56, %v268_v41 }
 0x143   :  { %v287_v55 = vadd.f32 0.4994258, %v286_v54  ;;  %v276_v60 = vadd.f32 0.18741608, %v275_v59 }
 0x145   :  { %v288_v57 = vmul.f32 %v287_v55, %v268_v41  ;;  %v277_v62 = vmul.f32 %v276_v60, %v268_v41 }
 0x147   :  { %v289_v58 = vadd.f32 1.0, %v288_v57  ;;  %v278_v2 = vadd.f32 1.1283791, %v277_v62 }
 0x149   :  { %644 = vrcp.f32 %v289_v58  ;;  %v301_v1 = vand.u32 2147483648, %v289_v58  ;;  %v299_v4 = vand.u32 2147483647, %v289_v58  ;;  %vm295_vm2 = vweird.f32 %v289_v58 }
 0x14a   :  { %v279_v7 = vmul.f32 %v278_v2, %v266_v39  ;;  %646 = vrcp.f32 %v815_v15 }
 0x14b   :  { %v302_v6 = vor.u32 1.1754944e-38, %v301_v1  ;;  %vm300_vm4 = vcmp.eq.f32.partialorder %v299_v4, 8.507059e+37 }
 0x14f   :  { %v645_v61 = vpop.eup %644 }
 0x150   :  { %v291_v63 = vmul.f32 %v645_v61, %v289_v58  ;;  %vm296_vm1 = vweird.f32 %v645_v61  ;;  %v647_v17 = vpop.eup %646 }
 0x151   :  { %vm297_vm3 = vmor %vm295_vm2, %vm296_vm1  ;;  %v312_v18 = vmul.f32 128.0, %v647_v17  ;;  %vm316_vm5 = vweird.f32 %v647_v17 }
 0x152   :  { %v292_v0 = vsub.f32 1.0, %v291_v63 }
 0x153   :  { %v313_v19 = vsub.f32 1.0, %v312_v18 }
 0x154   :  { %v293_v3 = vmul.f32 %v645_v61, %v292_v0 }
 0x155   :  { %v314_v20 = vmul.f32 %v647_v17, %v313_v19 }
 0x156   :  { %v294_v5 = vadd.f32 %v645_v61, %v293_v3 }
 0x157   :  { %v315_v21 = vadd.f32 %v647_v17, %v314_v20 }
 0x158   :  { %v298_v8 = vsel %vm297_vm3, %v645_v61, %v294_v5 }
 0x159   :  { %v303_v9 = vsel %vm300_vm4, %v302_v6, %v298_v8  ;;  %v906_v22 = vsel %vm316_vm5, %v647_v17, %v315_v21 }
 0x15a   :  { %v304_v10 = vmul.f32 %v303_v9, %v279_v7 }
 0x15c   :  { %v573_v11 = vclamps-f32 %v304_v10, 1.0 }
 0x15e   :  { %v307_v13 = vadd.f32 1.0, %v573_v11 }
 0x160   :  { %v308_v14 = vmul.f32 %v307_v13, %v265_v12 }
 0x162   :  { %309 = vadd.xlane.f32.xlu0 %v308_v14 }
 0x1d5   :  { %v310_v23 = vpop.xlane.xlu0 %309 }
 0x1d6   :  { %v318_v24 = vmul.f32 %v906_v22, %v310_v23 }
 0x1d8   :  { %v319_v25 = vsub.f32 %v308_v14, %v318_v24 }
 0x1da   :  { %v320_v26 = vmul.f32 %v319_v25, %v319_v25 }
 0x1dc   :  { %321 = vadd.xlane.f32.xlu0 %v320_v26 }
 0x24f   :  { %v322_v35 = vpop.xlane.xlu0 %321 }
 0x250   :  { %v323_v36 = vmul.f32 %v322_v35, %v906_v22 }
 0x252   :  { %v324_v37 = vadd.f32 1e-05, %v323_v36 }
 0x254   :  { %648 = vrsqrt.f32 %v324_v37  ;;  %vm331_vm7 = vweird.f32 %v324_v37 }
 0x25a   :  { %v649_v38 = vpop.eup %648 }
 0x25b   :  { %v326_v39 = vmul.f32 %v649_v38, %v324_v37  ;;  %vm332_vm6 = vweird.f32 %v649_v38 }
 0x25c   :  { %vm333_vm8 = vmor %vm331_vm7, %vm332_vm6 }
 0x25d   :  { %v327_v40 = vmul.f32 %v649_v38, %v326_v39 }
 0x25f   :  { %v328_v41 = vmul.f32 0.5, %v327_v40 }
 0x261   :  { %v329_v42 = vsub.f32 1.5, %v328_v41 }
 0x263   :  { %v330_v43 = vmul.f32 %v649_v38, %v329_v42 }
 0x265   :  { %v334_v45 = vsel %vm333_vm8, %v649_v38, %v330_v43 }
 0x266   :  { %v335_v46 = vmul.f32 %v334_v45, %v319_v25  ;;  %v642_v45 = vld [vmem:[%s941_s10] ss:$0 sm:$0xff] }
 0x268   :  { %v340_v48 = vmul.f32 %v639_v44, %v335_v46 }
 0x26a   :  { %v345_v49 = vadd.f32 %v640_v47, %v340_v48 }
 0x26c   :  { %v346_v50 = vpack.c.bf16 %v345_v49, %v345_v49 }
 0x26e   :  { %423 = vmatmul.bf16.vlgmr.msra.gmra.mxu3 %v346_v50 }
 0x2f1   :  { %v424_v52 = vpop.f32.mrf.mxu3 }
 0x2f2   :  { %v425_v53 = vadd.f32 %v641_v51, %v424_v52 }
 0x2f4   :  { %v429_v54 = vmul.f32 0.70710677, %v425_v53  ;;  %v428_v29 = vmul.f32 0.5, %v425_v53 }
 0x2f6   :  { %v430_v55 = vmul.f32 %v429_v54, %v429_v54 }
 0x2f8   :  { %v431_v56 = vmin.f32 %v430_v55, 16.0 }
 0x2f9   :  { %v426_v57 = vpop.f32.mrf.mxu3 }
 0x2fa   :  { %v432_v58 = vmul.f32 2.1237322e-06, %v431_v56  ;;  %v443_v59 = vmul.f32 3.8918573e-05, %v431_v56 }
 0x2fc   :  { %v433_v60 = vadd.f32 0.00028619796, %v432_v58  ;;  %v444_v61 = vadd.f32 0.001143296, %v443_v59 }
 0x2fe   :  { %v434_v62 = vmul.f32 %v433_v60, %v431_v56  ;;  %v445_v63 = vmul.f32 %v444_v61, %v431_v56 }
 0x300   :  { %v446_v0 = vadd.f32 0.014752088, %v445_v63  ;;  %v435_v1 = vadd.f32 0.0036580483, %v434_v62 }
 0x302   :  { %v447_v2 = vmul.f32 %v446_v0, %v431_v56  ;;  %v436_v4 = vmul.f32 %v435_v1, %v431_v56 }
 0x304   :  { %v448_v3 = vadd.f32 0.112945676, %v447_v2  ;;  %v437_v7 = vadd.f32 0.05243302, %v436_v4 }
 0x306   :  { %v449_v5 = vmul.f32 %v448_v3, %v431_v56  ;;  %v438_v10 = vmul.f32 %v437_v7, %v431_v56 }
 0x308   :  { %v450_v6 = vadd.f32 0.4994258, %v449_v5  ;;  %v439_v11 = vadd.f32 0.18741608, %v438_v10 }
 0x30a   :  { %v451_v8 = vmul.f32 %v450_v6, %v431_v56  ;;  %v440_v13 = vmul.f32 %v439_v11, %v431_v56 }
 0x30c   :  { %v452_v9 = vadd.f32 1.0, %v451_v8  ;;  %v441_v17 = vadd.f32 1.1283791, %v440_v13 }
 0x30e   :  { %650 = vrcp.f32 %v452_v9  ;;  %v464_v16 = vand.u32 2147483648, %v452_v9  ;;  %v462_v19 = vand.u32 2147483647, %v452_v9  ;;  %vm458_vm10 = vweird.f32 %v452_v9 }
 0x30f   :  { %v442_v23 = vmul.f32 %v441_v17, %v429_v54 }
 0x310   :  { %v465_v21 = vor.u32 1.1754944e-38, %v464_v16  ;;  %vm463_vm12 = vcmp.eq.f32.partialorder %v462_v19, 8.507059e+37 }
 0x314   :  { %v651_v12 = vpop.eup %650 }
 0x315   :  { %v454_v14 = vmul.f32 %v651_v12, %v452_v9  ;;  %vm459_vm9 = vweird.f32 %v651_v12 }
 0x316   :  { %vm460_vm11 = vmor %vm458_vm10, %vm459_vm9 }
 0x317   :  { %v455_v15 = vsub.f32 1.0, %v454_v14 }
 0x319   :  { %v456_v18 = vmul.f32 %v651_v12, %v455_v15 }
 0x31b   :  { %v457_v20 = vadd.f32 %v651_v12, %v456_v18 }
 0x31d   :  { %v461_v24 = vsel %vm460_vm11, %v651_v12, %v457_v20 }
 0x31e   :  { %v466_v25 = vsel %vm463_vm12, %v465_v21, %v461_v24 }
 0x31f   :  { %v467_v26 = vmul.f32 %v466_v25, %v442_v23 }
 0x321   :  { %v606_v27 = vclamps-f32 %v467_v26, 1.0 }
 0x323   :  { %v470_v30 = vadd.f32 1.0, %v606_v27 }
 0x325   :  { %v471_v31 = vmul.f32 %v470_v30, %v428_v29 }
 0x327   :  { %472 = vadd.xlane.f32.xlu1 %v471_v31 }
 0x39a   :  { %v473_v32 = vpop.xlane.xlu1 %472 }
 0x39b   :  { %v474_v33 = vmul.f32 %v473_v32, %v906_v22 }
 0x39d   :  { %v475_v34 = vsub.f32 %v471_v31, %v474_v33 }
 0x39f   :  { %v476_v35 = vmul.f32 %v475_v34, %v475_v34 }
 0x3a1   :  { %477 = vadd.xlane.f32.xlu1 %v476_v35 }
 0x414   :  { %v478_v36 = vpop.xlane.xlu1 %477 }
 0x415   :  { %v479_v37 = vmul.f32 %v478_v36, %v906_v22  ;;  %v643_v22 = vld [vmem:[%s942_s11] ss:$0 sm:$0xff] }
 0x417   :  { %v480_v38 = vadd.f32 1e-05, %v479_v37 }
 0x419   :  { %652 = vrsqrt.f32 %v480_v38  ;;  %vm487_vm14 = vweird.f32 %v480_v38 }
 0x41f   :  { %v653_v39 = vpop.eup %652 }
 0x420   :  { %v482_v40 = vmul.f32 %v653_v39, %v480_v38  ;;  %vm488_vm13 = vweird.f32 %v653_v39 }
 0x421   :  { %vm489_vm15 = vmor %vm487_vm14, %vm488_vm13 }
 0x422   :  { %v483_v41 = vmul.f32 %v653_v39, %v482_v40 }
 0x424   :  { %v484_v42 = vmul.f32 0.5, %v483_v41 }
 0x426   :  { %v485_v43 = vsub.f32 1.5, %v484_v42 }
 0x428   :  { %v486_v44 = vmul.f32 %v653_v39, %v485_v43 }
 0x42a   :  { %v490_v46 = vsel %vm489_vm15, %v653_v39, %v486_v44 }
 0x42b   :  { %v491_v47 = vmul.f32 %v490_v46, %v475_v34 }
 0x42d   :  { %v496_v48 = vmul.f32 %v642_v45, %v491_v47 }
 0x42f   :  { %v501_v49 = vadd.f32 %v643_v22, %v496_v48 }
 0x431   :  { %v502_v50 = vadd.f32 %v501_v49, %v900_v28 }
 0x433   :  { %503 = vst [vmem:[#allocation11] sm:$0xff] %v502_v50 }
 0x434   :  { %514 = dma.vmem_to_hbm [thread:$0]  %s510_s18, 128, %s512_s4, [#allocation4]  }
 0x435   :  { %804 = dma.done.wait [#allocation4], 128  }
 0x436   :  { %805 = vsyncadd [#allocation4], 4294967168 }
 0x437   :  { %519 = vsyncpa [#allocation3], 1 }
 0x438   :  { %520 = vsyncpa [#allocation6], 1 }
 0x439   :  { %521 = vsyncpa [#allocation9], 1 }
 0x43a   :  { %522 = vsyncpa [#allocation4], 1 }

</bundles_post_ra>
